<compile_context>
chip_gen: v7x
topology: tpu7x:2x2x1
jax: 0.10.0
libtpu: 0.0.40
codegen_flags: <defaults>
</compile_context>

<pallas_src>
import jax
import jax.numpy as jnp
from jax.experimental import pallas as pl
from jax.experimental.pallas import tpu as pltpu

# ----- model dimensions (small, consistent with the module's forward) -----
OUTPUT_DIM = 64    # vocab size
EMB_DIM = 16
ENC_OUT_DIM = 32
DEC_HID_DIM = 32
BATCH = 4
B_PAD = 8          # pad batch to the f32 sublane count
SRC_LEN = 8
T_STEPS = 5        # number of fused decode steps (teacher-forced tokens)

PACK = OUTPUT_DIM + 2 * DEC_HID_DIM   # 128 -> lane-dense packed output slab


# ----------------------------- Pallas kernel ------------------------------
def _fused_decoder_kernel(
    emb_ref, enc_ref, maskb_ref, h1_init_ref, h2_init_ref,
    wa_h_ref, wa_e_ref, b_attn_ref, v_attn_ref,
    w1_e_ref, w1_w_ref, w1_h_ref, b1_i_ref, b1_h_ref,
    w2_h1_ref, w2_w_ref, w2_h_ref, b2_i_ref, b2_h_ref,
    wf_h_ref, wf_w_ref, wf_e_ref, b_fc_ref,
    out_ref,
    h1_scr, h2_scr,
):
    t = pl.program_id(0)

    # initialize the VMEM-carried hidden state at the first decode step
    @pl.when(t == 0)
    def _():
        h1_scr[...] = h1_init_ref[...]
        h2_scr[...] = h2_init_ref[...]

    emb = emb_ref[0]              # (B, EMB)   this step's embedded tokens
    enc = enc_ref[...]            # (B, S, E)
    mask_bias = maskb_ref[...]    # (B, S)  0 = valid, -1e9 = pad
    h1 = h1_scr[...]              # (B, H)
    h2 = h2_scr[...]              # (B, H)

    B, S, E = enc.shape
    H = h1.shape[1]

    # ---- additive attention (split projections, no broadcast+concat) ----
    proj_h = jnp.dot(h1, wa_h_ref[...],
                     preferred_element_type=jnp.float32) + b_attn_ref[...]   # (B,H)
    proj_e = jnp.dot(enc.reshape(B * S, E), wa_e_ref[...],
                     preferred_element_type=jnp.float32).reshape(B, S, H)    # (B,S,H)
    energy = jnp.tanh(proj_e + proj_h[:, None, :])                           # (B,S,H)
    # scores via VPU multiply + lane reduce (avoids a width-1 MXU matmul)
    scores = jnp.sum(energy * v_attn_ref[...], axis=-1) + mask_bias          # (B,S)
    m = jnp.max(scores, axis=-1, keepdims=True)
    p = jnp.exp(scores - m)
    denom = jnp.sum(p, axis=-1, keepdims=True)
    a = p * pl.reciprocal(denom, approx=True)                                # (B,S)

    # ---- weighted context ----
    weighted = jnp.sum(a[:, :, None] * enc, axis=1)                          # (B,E)

    # ---- GRU cell (gates stacked on leading axis: [r, z, n]) ----
    def gru(x_a, w_a_ref, x_b, w_b_ref, h, w_h_ref, b_i_ref, b_h_ref):
        def gi(g):
            return (jnp.dot(x_a, w_a_ref[g], preferred_element_type=jnp.float32)
                    + jnp.dot(x_b, w_b_ref[g], preferred_element_type=jnp.float32)
                    + b_i_ref[g])
        def gh(g):
            return (jnp.dot(h, w_h_ref[g], preferred_element_type=jnp.float32)
                    + b_h_ref[g])
        r = jax.nn.sigmoid(gi(0) + gh(0))
        z = jax.nn.sigmoid(gi(1) + gh(1))
        n = jnp.tanh(gi(2) + r * gh(2))
        return (1.0 - z) * n + z * h

    h1_new = gru(emb, w1_e_ref, weighted, w1_w_ref, h1,
                 w1_h_ref, b1_i_ref, b1_h_ref)                               # (B,H)
    h2_new = gru(h1_new, w2_h1_ref, weighted, w2_w_ref, h2,
                 w2_h_ref, b2_i_ref, b2_h_ref)                               # (B,H)

    # ---- fc_out as three row-block matmuls (no lane concat of features) ----
    pred = (jnp.dot(h2_new, wf_h_ref[...], preferred_element_type=jnp.float32)
            + jnp.dot(weighted, wf_w_ref[...], preferred_element_type=jnp.float32)
            + jnp.dot(emb, wf_e_ref[...], preferred_element_type=jnp.float32)
            + b_fc_ref[...])                                                 # (B,OUT)

    # carry state to next grid step
    h1_scr[...] = h1_new
    h2_scr[...] = h2_new

    # packed lane-dense output slab: [pred | h1_new | h2_new] -> (B, 128)
    out_ref[0] = jnp.concatenate([pred, h1_new, h2_new], axis=-1)


# ------------------------------ JAX wrapper -------------------------------
def init_params(key):
    ks = jax.random.split(key, 12)
    s = 0.1
    return {
        "embedding": jax.random.normal(ks[0], (OUTPUT_DIM, EMB_DIM), jnp.float32) * s,
        # attention: W (H+E, H), b (1, H), v (H, 1)
        "w_attn": jax.random.normal(ks[1], (DEC_HID_DIM + ENC_OUT_DIM, DEC_HID_DIM), jnp.float32) * s,
        "b_attn": jnp.zeros((1, DEC_HID_DIM), jnp.float32),
        "v_attn": jax.random.normal(ks[2], (DEC_HID_DIM, 1), jnp.float32) * s,
        # GRU1: input size EMB+E, hidden H; gates ordered [r, z, n]
        "w_ih1": jax.random.normal(ks[3], (EMB_DIM + ENC_OUT_DIM, 3 * DEC_HID_DIM), jnp.float32) * s,
        "w_hh1": jax.random.normal(ks[4], (DEC_HID_DIM, 3 * DEC_HID_DIM), jnp.float32) * s,
        "b_ih1": jax.random.normal(ks[5], (1, 3 * DEC_HID_DIM), jnp.float32) * s,
        "b_hh1": jax.random.normal(ks[6], (1, 3 * DEC_HID_DIM), jnp.float32) * s,
        # GRU2: input size H+E, hidden H
        "w_ih2": jax.random.normal(ks[7], (DEC_HID_DIM + ENC_OUT_DIM, 3 * DEC_HID_DIM), jnp.float32) * s,
        "w_hh2": jax.random.normal(ks[8], (DEC_HID_DIM, 3 * DEC_HID_DIM), jnp.float32) * s,
        "b_ih2": jax.random.normal(ks[9], (1, 3 * DEC_HID_DIM), jnp.float32) * s,
        "b_hh2": jax.random.normal(ks[10], (1, 3 * DEC_HID_DIM), jnp.float32) * s,
        # fc_out: (H + E + EMB, OUTPUT_DIM)
        "w_fc": jax.random.normal(ks[11], (DEC_HID_DIM + ENC_OUT_DIM + EMB_DIM, OUTPUT_DIM), jnp.float32) * s,
        "b_fc": jnp.zeros((1, OUTPUT_DIM), jnp.float32),
    }


@jax.jit
def lstm_decoder_decode(tokens_seq, hidden1, hidden2, encoder_outputs,
                        encoder_padding_mask, params):
    """Runs T chained decode steps of the module's forward in ONE pallas_call.

    tokens_seq: (T, B) int32 (teacher-forced input tokens per step)
    hidden1/2: (B, H); encoder_outputs: (S, B, E) (PyTorch layout);
    encoder_padding_mask: (B, S) bool, True = valid token.
    Returns (predictions (T, B, OUTPUT_DIM), hidden1_final, hidden2_final).
    """
    H, E, EMB, OUT, S = DEC_HID_DIM, ENC_OUT_DIM, EMB_DIM, OUTPUT_DIM, SRC_LEN
    T, B = tokens_seq.shape
    pad = B_PAD - B

    # one-time glue for the whole decode (amortized over T steps)
    emb_all = params["embedding"][tokens_seq]                       # (T, B, EMB)
    emb_all = jnp.pad(emb_all, ((0, 0), (0, pad), (0, 0)))
    enc = jnp.transpose(encoder_outputs, (1, 0, 2))                 # (B, S, E)
    enc = jnp.pad(enc, ((0, pad), (0, 0), (0, 0)))
    mask_bias = jnp.where(encoder_padding_mask, 0.0, -1e9).astype(jnp.float32)
    mask_bias = jnp.pad(mask_bias, ((0, pad), (0, 0)))              # padded rows: all 0 (harmless)
    h1_init = jnp.pad(hidden1, ((0, pad), (0, 0)))
    h2_init = jnp.pad(hidden2, ((0, pad), (0, 0)))

    # split weights once so the kernel never concatenates along the lane axis
    wa_h, wa_e = params["w_attn"][:H], params["w_attn"][H:]
    v_attn = params["v_attn"].T                                     # (1, H) row

    def stack_gates(w, in_dim):                                     # (in, 3H) -> (3, in, H)
        return jnp.transpose(w.reshape(in_dim, 3, H), (1, 0, 2))

    w1_e = stack_gates(params["w_ih1"][:EMB], EMB)
    w1_w = stack_gates(params["w_ih1"][EMB:], E)
    w1_h = stack_gates(params["w_hh1"], H)
    b1_i = params["b_ih1"].reshape(3, 1, H)
    b1_h = params["b_hh1"].reshape(3, 1, H)

    w2_h1 = stack_gates(params["w_ih2"][:H], H)
    w2_w = stack_gates(params["w_ih2"][H:], E)
    w2_h = stack_gates(params["w_hh2"], H)
    b2_i = params["b_ih2"].reshape(3, 1, H)
    b2_h = params["b_hh2"].reshape(3, 1, H)

    wf_h = params["w_fc"][:H]
    wf_w = params["w_fc"][H:H + E]
    wf_e = params["w_fc"][H + E:]
    b_fc = params["b_fc"]

    c2 = lambda t: (0, 0)          # resident (constant index map) 2-D blocks
    c3 = lambda t: (0, 0, 0)       # resident 3-D blocks

    in_specs = [
        pl.BlockSpec((1, B_PAD, EMB), lambda t: (t, 0, 0)),   # emb_all (per-step)
        pl.BlockSpec((B_PAD, S, E), c3),                      # enc
        pl.BlockSpec((B_PAD, S), c2),                         # mask_bias
        pl.BlockSpec((B_PAD, H), c2),                         # h1_init
        pl.BlockSpec((B_PAD, H), c2),                         # h2_init
        pl.BlockSpec((H, H), c2),                             # wa_h
        pl.BlockSpec((E, H), c2),                             # wa_e
        pl.BlockSpec((1, H), c2),                             # b_attn
        pl.BlockSpec((1, H), c2),                             # v_attn
        pl.BlockSpec((3, EMB, H), c3),                        # w1_e
        pl.BlockSpec((3, E, H), c3),                          # w1_w
        pl.BlockSpec((3, H, H), c3),                          # w1_h
        pl.BlockSpec((3, 1, H), c3),                          # b1_i
        pl.BlockSpec((3, 1, H), c3),                          # b1_h
        pl.BlockSpec((3, H, H), c3),                          # w2_h1
        pl.BlockSpec((3, E, H), c3),                          # w2_w
        pl.BlockSpec((3, H, H), c3),                          # w2_h
        pl.BlockSpec((3, 1, H), c3),                          # b2_i
        pl.BlockSpec((3, 1, H), c3),                          # b2_h
        pl.BlockSpec((H, OUT), c2),                           # wf_h
        pl.BlockSpec((E, OUT), c2),                           # wf_w
        pl.BlockSpec((EMB, OUT), c2),                         # wf_e
        pl.BlockSpec((1, OUT), c2),                           # b_fc
    ]

    out = pl.pallas_call(
        _fused_decoder_kernel,
        out_shape=jax.ShapeDtypeStruct((T, B_PAD, PACK), jnp.float32),
        grid_spec=pltpu.PrefetchScalarGridSpec(
            num_scalar_prefetch=0,
            grid=(T,),
            in_specs=in_specs,
            out_specs=pl.BlockSpec((1, B_PAD, PACK), lambda t: (t, 0, 0)),
            scratch_shapes=[pltpu.VMEM((B_PAD, H), jnp.float32),   # carried h1
                            pltpu.VMEM((B_PAD, H), jnp.float32)],  # carried h2
        ),
        compiler_params=pltpu.CompilerParams(
            dimension_semantics=("arbitrary",)),   # serial time loop, single TC
    )(emb_all, enc, mask_bias, h1_init, h2_init,
      wa_h, wa_e, params["b_attn"], v_attn,
      w1_e, w1_w, w1_h, b1_i, b1_h,
      w2_h1, w2_w, w2_h, b2_i, b2_h,
      wf_h, wf_w, wf_e, b_fc)

    preds = out[:, :B, :OUT]                    # (T, B, OUTPUT_DIM)
    h1_fin = out[-1, :B, OUT:OUT + H]           # (B, H)
    h2_fin = out[-1, :B, OUT + H:OUT + 2 * H]   # (B, H)
    return preds, h1_fin, h2_fin


# ------------------------- pure-JAX reference (sanity) -------------------------
def reference_step(tokens, h1, h2, encoder_outputs, mask_bool, p):
    emb = p["embedding"][tokens]
    enc = jnp.transpose(encoder_outputs, (1, 0, 2))
    B, S, E = enc.shape
    H = h1.shape[1]
    h_rep = jnp.broadcast_to(h1[:, None, :], (B, S, H))
    cat_a = jnp.concatenate([h_rep, enc], axis=-1).reshape(B * S, H + E)
    energy = jnp.tanh(cat_a @ p["w_attn"] + p["b_attn"])
    scores = (energy @ p["v_attn"]).reshape(B, S)
    scores = jnp.where(mask_bool, scores, -1e9)
    a = jax.nn.softmax(scores, axis=-1)
    weighted = jnp.einsum("bs,bse->be", a, enc)

    def gru(x, h, wih, whh, bih, bhh):
        gi = x @ wih + bih
        gh = h @ whh + bhh
        r = jax.nn.sigmoid(gi[:, :H] + gh[:, :H])
        z = jax.nn.sigmoid(gi[:, H:2 * H] + gh[:, H:2 * H])
        n = jnp.tanh(gi[:, 2 * H:] + r * gh[:, 2 * H:])
        return (1.0 - z) * n + z * h

    h1n = gru(jnp.concatenate([emb, weighted], -1), h1,
              p["w_ih1"], p["w_hh1"], p["b_ih1"], p["b_hh1"])
    h2n = gru(jnp.concatenate([h1n, weighted], -1), h2,
              p["w_ih2"], p["w_hh2"], p["b_ih2"], p["b_hh2"])
    pred = jnp.concatenate([h2n, weighted, emb], -1) @ p["w_fc"] + p["b_fc"]
    return pred, h1n, h2n


def reference_decode(tokens_seq, h1, h2, encoder_outputs, mask_bool, p):
    preds = []
    for t in range(tokens_seq.shape[0]):
        pred, h1, h2 = reference_step(tokens_seq[t], h1, h2, encoder_outputs, mask_bool, p)
        preds.append(pred)
    return jnp.stack(preds), h1, h2


if __name__ == "__main__":
    key = jax.random.PRNGKey(0)
    k_tok, k_h1, k_h2, k_enc = jax.random.split(key, 4)

    tokens_seq = jax.random.randint(k_tok, (T_STEPS, BATCH), 0, OUTPUT_DIM, dtype=jnp.int32)
    hidden1 = jax.random.normal(k_h1, (BATCH, DEC_HID_DIM), jnp.float32)
    hidden2 = jax.random.normal(k_h2, (BATCH, DEC_HID_DIM), jnp.float32)
    encoder_outputs = jax.random.normal(k_enc, (SRC_LEN, BATCH, ENC_OUT_DIM), jnp.float32)
    # mask: True = valid token; some trailing source positions are padding
    lengths = jnp.array([SRC_LEN, SRC_LEN - 1, SRC_LEN - 2, SRC_LEN], dtype=jnp.int32)
    encoder_padding_mask = (jnp.arange(SRC_LEN)[None, :] < lengths[:, None])

    params = init_params(jax.random.PRNGKey(42))

    preds, h1_fin, h2_fin = lstm_decoder_decode(
        tokens_seq, hidden1, hidden2, encoder_outputs, encoder_padding_mask, params
    )
    jax.block_until_ready((preds, h1_fin, h2_fin))

    # sanity check against pure-JAX reference (tolerance loosened slightly for
    # pl.reciprocal(approx=True) in the softmax denominator)
    preds_r, h1_r, h2_r = reference_decode(
        tokens_seq, hidden1, hidden2, encoder_outputs, encoder_padding_mask, params
    )
    assert preds.shape == (T_STEPS, BATCH, OUTPUT_DIM)
    assert h1_fin.shape == (BATCH, DEC_HID_DIM) and h2_fin.shape == (BATCH, DEC_HID_DIM)
    assert jnp.allclose(preds, preds_r, atol=5e-3, rtol=5e-3)
    assert jnp.allclose(h1_fin, h1_r, atol=5e-3, rtol=5e-3)
    assert jnp.allclose(h2_fin, h2_r, atol=5e-3, rtol=5e-3)

    print("KERNEL_OK")
</pallas_src>

<mosaic_0001>
module attributes {stable_mosaic.version = 11 : i64} {
  func.func @_fused_decoder_kernel(%arg0: i32, %arg1: memref<1x8x16xf32, #tpu.memory_space<vmem>>, %arg2: memref<8x8x32xf32, #tpu.memory_space<vmem>>, %arg3: memref<8x8xf32, #tpu.memory_space<vmem>>, %arg4: memref<8x32xf32, #tpu.memory_space<vmem>>, %arg5: memref<8x32xf32, #tpu.memory_space<vmem>>, %arg6: memref<32x32xf32, #tpu.memory_space<vmem>>, %arg7: memref<32x32xf32, #tpu.memory_space<vmem>>, %arg8: memref<1x32xf32, #tpu.memory_space<vmem>>, %arg9: memref<1x32xf32, #tpu.memory_space<vmem>>, %arg10: memref<3x16x32xf32, #tpu.memory_space<vmem>>, %arg11: memref<3x32x32xf32, #tpu.memory_space<vmem>>, %arg12: memref<3x32x32xf32, #tpu.memory_space<vmem>>, %arg13: memref<3x1x32xf32, #tpu.memory_space<vmem>>, %arg14: memref<3x1x32xf32, #tpu.memory_space<vmem>>, %arg15: memref<3x32x32xf32, #tpu.memory_space<vmem>>, %arg16: memref<3x32x32xf32, #tpu.memory_space<vmem>>, %arg17: memref<3x32x32xf32, #tpu.memory_space<vmem>>, %arg18: memref<3x1x32xf32, #tpu.memory_space<vmem>>, %arg19: memref<3x1x32xf32, #tpu.memory_space<vmem>>, %arg20: memref<32x64xf32, #tpu.memory_space<vmem>>, %arg21: memref<32x64xf32, #tpu.memory_space<vmem>>, %arg22: memref<16x64xf32, #tpu.memory_space<vmem>>, %arg23: memref<1x64xf32, #tpu.memory_space<vmem>>, %arg24: memref<1x8x128xf32, #tpu.memory_space<vmem>>, %arg25: memref<8x32xf32, #tpu.memory_space<vmem>>, %arg26: memref<8x32xf32, #tpu.memory_space<vmem>>) attributes {dimension_semantics = [#tpu.dimension_semantics<arbitrary>], iteration_bounds = array<i64: 5>, scalar_prefetch = 0 : i64, scratch_operands = 2 : i64, tpu.core_type = #tpu.core_type<tc>, window_params = [{transform_indices = @transform_0, window_bounds = array<i64: 1, 8, 16>}, {pipeline_mode = #tpu.pipeline_mode<synchronous>, transform_indices = @transform_1, window_bounds = array<i64: 8, 8, 32>}, {pipeline_mode = #tpu.pipeline_mode<synchronous>, transform_indices = @transform_2, window_bounds = array<i64: 8, 8>}, {pipeline_mode = #tpu.pipeline_mode<synchronous>, transform_indices = @transform_3, window_bounds = array<i64: 8, 32>}, {pipeline_mode = #tpu.pipeline_mode<synchronous>, transform_indices = @transform_4, window_bounds = array<i64: 8, 32>}, {pipeline_mode = #tpu.pipeline_mode<synchronous>, transform_indices = @transform_5, window_bounds = array<i64: 32, 32>}, {pipeline_mode = #tpu.pipeline_mode<synchronous>, transform_indices = @transform_6, window_bounds = array<i64: 32, 32>}, {pipeline_mode = #tpu.pipeline_mode<synchronous>, transform_indices = @transform_7, window_bounds = array<i64: 1, 32>}, {pipeline_mode = #tpu.pipeline_mode<synchronous>, transform_indices = @transform_8, window_bounds = array<i64: 1, 32>}, {pipeline_mode = #tpu.pipeline_mode<synchronous>, transform_indices = @transform_9, window_bounds = array<i64: 3, 16, 32>}, {pipeline_mode = #tpu.pipeline_mode<synchronous>, transform_indices = @transform_10, window_bounds = array<i64: 3, 32, 32>}, {pipeline_mode = #tpu.pipeline_mode<synchronous>, transform_indices = @transform_11, window_bounds = array<i64: 3, 32, 32>}, {pipeline_mode = #tpu.pipeline_mode<synchronous>, transform_indices = @transform_12, window_bounds = array<i64: 3, 1, 32>}, {pipeline_mode = #tpu.pipeline_mode<synchronous>, transform_indices = @transform_13, window_bounds = array<i64: 3, 1, 32>}, {pipeline_mode = #tpu.pipeline_mode<synchronous>, transform_indices = @transform_14, window_bounds = array<i64: 3, 32, 32>}, {pipeline_mode = #tpu.pipeline_mode<synchronous>, transform_indices = @transform_15, window_bounds = array<i64: 3, 32, 32>}, {pipeline_mode = #tpu.pipeline_mode<synchronous>, transform_indices = @transform_16, window_bounds = array<i64: 3, 32, 32>}, {pipeline_mode = #tpu.pipeline_mode<synchronous>, transform_indices = @transform_17, window_bounds = array<i64: 3, 1, 32>}, {pipeline_mode = #tpu.pipeline_mode<synchronous>, transform_indices = @transform_18, window_bounds = array<i64: 3, 1, 32>}, {pipeline_mode = #tpu.pipeline_mode<synchronous>, transform_indices = @transform_19, window_bounds = array<i64: 32, 64>}, {pipeline_mode = #tpu.pipeline_mode<synchronous>, transform_indices = @transform_20, window_bounds = array<i64: 32, 64>}, {pipeline_mode = #tpu.pipeline_mode<synchronous>, transform_indices = @transform_21, window_bounds = array<i64: 16, 64>}, {pipeline_mode = #tpu.pipeline_mode<synchronous>, transform_indices = @transform_22, window_bounds = array<i64: 1, 64>}, {transform_indices = @transform_23, window_bounds = array<i64: 1, 8, 128>}]} {
    %c0_i32 = arith.constant 0 : i32
    %0 = arith.cmpi eq, %arg0, %c0_i32 : i32
    %1 = arith.extui %0 : i1 to i32
    %c0_i32_0 = arith.constant 0 : i32
    %2 = arith.cmpi ne, %1, %c0_i32_0 : i32
    scf.if %2 {
      %c0_155 = arith.constant 0 : index
      %c0_156 = arith.constant 0 : index
      %207 = vector.load %arg4[%c0_155, %c0_156] : memref<8x32xf32, #tpu.memory_space<vmem>>, vector<8x32xf32>
      %c0_157 = arith.constant 0 : index
      %c0_158 = arith.constant 0 : index
      %208 = vector.load %arg25[%c0_157, %c0_158] : memref<8x32xf32, #tpu.memory_space<vmem>>, vector<8x32xf32>
      tpu.vector_store %arg25[%c0_157, %c0_158], %207 {strides = array<i32>} : memref<8x32xf32, #tpu.memory_space<vmem>>, vector<8x32xf32>,
      %c0_159 = arith.constant 0 : index
      %c0_160 = arith.constant 0 : index
      %209 = vector.load %arg5[%c0_159, %c0_160] : memref<8x32xf32, #tpu.memory_space<vmem>>, vector<8x32xf32>
      %c0_161 = arith.constant 0 : index
      %c0_162 = arith.constant 0 : index
      %210 = vector.load %arg26[%c0_161, %c0_162] : memref<8x32xf32, #tpu.memory_space<vmem>>, vector<8x32xf32>
      tpu.vector_store %arg26[%c0_161, %c0_162], %209 {strides = array<i32>} : memref<8x32xf32, #tpu.memory_space<vmem>>, vector<8x32xf32>,
    } else {
    }
    %c0 = arith.constant 0 : index
    %c0_1 = arith.constant 0 : index
    %c0_2 = arith.constant 0 : index
    %3 = vector.load %arg1[%c0, %c0_1, %c0_2] : memref<1x8x16xf32, #tpu.memory_space<vmem>>, vector<1x8x16xf32>
    %4 = vector.shape_cast %3 : vector<1x8x16xf32> to vector<8x16xf32>
    %c0_3 = arith.constant 0 : index
    %c0_4 = arith.constant 0 : index
    %c0_5 = arith.constant 0 : index
    %5 = vector.load %arg2[%c0_3, %c0_4, %c0_5] : memref<8x8x32xf32, #tpu.memory_space<vmem>>, vector<8x8x32xf32>
    %c0_6 = arith.constant 0 : index
    %c0_7 = arith.constant 0 : index
    %6 = vector.load %arg3[%c0_6, %c0_7] : memref<8x8xf32, #tpu.memory_space<vmem>>, vector<8x8xf32>
    %c0_8 = arith.constant 0 : index
    %c0_9 = arith.constant 0 : index
    %7 = vector.load %arg25[%c0_8, %c0_9] : memref<8x32xf32, #tpu.memory_space<vmem>>, vector<8x32xf32>
    %c0_10 = arith.constant 0 : index
    %c0_11 = arith.constant 0 : index
    %8 = vector.load %arg26[%c0_10, %c0_11] : memref<8x32xf32, #tpu.memory_space<vmem>>, vector<8x32xf32>
    %c0_12 = arith.constant 0 : index
    %c0_13 = arith.constant 0 : index
    %9 = vector.load %arg6[%c0_12, %c0_13] : memref<32x32xf32, #tpu.memory_space<vmem>>, vector<32x32xf32>
    %cst = arith.constant dense<0.000000e+00> : vector<8x32xf32>
    %10 = tpu.matmul %7, %9, %cst {dimension_numbers = #tpu.dot_dimension_numbers<[1], [0], [0], [1], [0, 0, 1, 1], [], []>} : vector<8x32xf32>, vector<32x32xf32>, vector<8x32xf32> -> vector<8x32xf32>
    %c0_14 = arith.constant 0 : index
    %c0_15 = arith.constant 0 : index
    %11 = vector.load %arg8[%c0_14, %c0_15] : memref<1x32xf32, #tpu.memory_space<vmem>>, vector<1x32xf32>
    %12 = vector.broadcast %11 : vector<1x32xf32> to vector<8x32xf32>
    %13 = arith.addf %10, %12 : vector<8x32xf32>
    %14 = vector.shape_cast %5 : vector<8x8x32xf32> to vector<64x32xf32>
    %c0_16 = arith.constant 0 : index
    %c0_17 = arith.constant 0 : index
    %15 = vector.load %arg7[%c0_16, %c0_17] : memref<32x32xf32, #tpu.memory_space<vmem>>, vector<32x32xf32>
    %cst_18 = arith.constant dense<0.000000e+00> : vector<64x32xf32>
    %16 = tpu.matmul %14, %15, %cst_18 {dimension_numbers = #tpu.dot_dimension_numbers<[1], [0], [0], [1], [0, 0, 1, 1], [], []>} : vector<64x32xf32>, vector<32x32xf32>, vector<64x32xf32> -> vector<64x32xf32>
    %17 = vector.shape_cast %16 : vector<64x32xf32> to vector<8x8x32xf32>
    %18 = vector.shape_cast %13 : vector<8x32xf32> to vector<8x1x32xf32>
    %19 = vector.broadcast %18 : vector<8x1x32xf32> to vector<8x8x32xf32>
    %20 = arith.addf %17, %19 : vector<8x8x32xf32>
    %21 = math.tanh %20 : vector<8x8x32xf32>
    %c0_19 = arith.constant 0 : index
    %c0_20 = arith.constant 0 : index
    %22 = vector.load %arg9[%c0_19, %c0_20] : memref<1x32xf32, #tpu.memory_space<vmem>>, vector<1x32xf32>
    %23 = vector.shape_cast %22 : vector<1x32xf32> to vector<1x1x32xf32>
    %24 = vector.broadcast %23 : vector<1x1x32xf32> to vector<8x8x32xf32>
    %25 = arith.mulf %21, %24 : vector<8x8x32xf32>
    %cst_21 = arith.constant dense<0.000000e+00> : vector<8x8xf32>
    %26 = vector.multi_reduction <add>, %25, %cst_21 [2] : vector<8x8x32xf32> to vector<8x8xf32>
    %27 = arith.addf %26, %6 : vector<8x8xf32>
    %cst_22 = arith.constant dense<0xFF800000> : vector<8xf32>
    %28 = vector.multi_reduction <maximumf>, %27, %cst_22 [1] : vector<8x8xf32> to vector<8xf32>
    %29 = vector.shape_cast %28 : vector<8xf32> to vector<8x1xf32>
    %30 = vector.broadcast %29 : vector<8x1xf32> to vector<8x8xf32>
    %31 = arith.subf %27, %30 : vector<8x8xf32>
    %32 = math.exp %31 : vector<8x8xf32>
    %cst_23 = arith.constant dense<0.000000e+00> : vector<8xf32>
    %33 = vector.multi_reduction <add>, %32, %cst_23 [1] : vector<8x8xf32> to vector<8xf32>
    %34 = vector.shape_cast %33 : vector<8xf32> to vector<8x1xf32>
    %35 = tpu.reciprocal %34 {approx = true} : vector<8x1xf32> -> vector<8x1xf32>
    %36 = vector.broadcast %35 : vector<8x1xf32> to vector<8x8xf32>
    %37 = arith.mulf %32, %36 : vector<8x8xf32>
    %38 = vector.shape_cast %37 : vector<8x8xf32> to vector<8x8x1xf32>
    %39 = vector.broadcast %38 : vector<8x8x1xf32> to vector<8x8x32xf32>
    %40 = arith.mulf %39, %5 : vector<8x8x32xf32>
    %cst_24 = arith.constant dense<0.000000e+00> : vector<8x32xf32>
    %41 = vector.multi_reduction <add>, %40, %cst_24 [1] : vector<8x8x32xf32> to vector<8x32xf32>
    %c0_25 = arith.constant 0 : index
    %c0_26 = arith.constant 0 : index
    %c0_27 = arith.constant 0 : index
    %42 = vector.load %arg10[%c0_25, %c0_26, %c0_27] : memref<3x16x32xf32, #tpu.memory_space<vmem>>, vector<1x16x32xf32>
    %43 = vector.shape_cast %42 : vector<1x16x32xf32> to vector<16x32xf32>
    %cst_28 = arith.constant dense<0.000000e+00> : vector<8x32xf32>
    %44 = tpu.matmul %4, %43, %cst_28 {dimension_numbers = #tpu.dot_dimension_numbers<[1], [0], [0], [1], [0, 0, 1, 1], [], []>} : vector<8x16xf32>, vector<16x32xf32>, vector<8x32xf32> -> vector<8x32xf32>
    %c0_29 = arith.constant 0 : index
    %c0_30 = arith.constant 0 : index
    %c0_31 = arith.constant 0 : index
    %45 = vector.load %arg11[%c0_29, %c0_30, %c0_31] : memref<3x32x32xf32, #tpu.memory_space<vmem>>, vector<1x32x32xf32>
    %46 = vector.shape_cast %45 : vector<1x32x32xf32> to vector<32x32xf32>
    %cst_32 = arith.constant dense<0.000000e+00> : vector<8x32xf32>
    %47 = tpu.matmul %41, %46, %cst_32 {dimension_numbers = #tpu.dot_dimension_numbers<[1], [0], [0], [1], [0, 0, 1, 1], [], []>} : vector<8x32xf32>, vector<32x32xf32>, vector<8x32xf32> -> vector<8x32xf32>
    %48 = arith.addf %44, %47 : vector<8x32xf32>
    %c0_33 = arith.constant 0 : index
    %c0_34 = arith.constant 0 : index
    %c0_35 = arith.constant 0 : index
    %49 = vector.load %arg13[%c0_33, %c0_34, %c0_35] : memref<3x1x32xf32, #tpu.memory_space<vmem>>, vector<1x1x32xf32>
    %50 = vector.shape_cast %49 : vector<1x1x32xf32> to vector<1x32xf32>
    %51 = vector.broadcast %50 : vector<1x32xf32> to vector<8x32xf32>
    %52 = arith.addf %48, %51 : vector<8x32xf32>
    %c0_36 = arith.constant 0 : index
    %c0_37 = arith.constant 0 : index
    %c0_38 = arith.constant 0 : index
    %53 = vector.load %arg12[%c0_36, %c0_37, %c0_38] : memref<3x32x32xf32, #tpu.memory_space<vmem>>, vector<1x32x32xf32>
    %54 = vector.shape_cast %53 : vector<1x32x32xf32> to vector<32x32xf32>
    %cst_39 = arith.constant dense<0.000000e+00> : vector<8x32xf32>
    %55 = tpu.matmul %7, %54, %cst_39 {dimension_numbers = #tpu.dot_dimension_numbers<[1], [0], [0], [1], [0, 0, 1, 1], [], []>} : vector<8x32xf32>, vector<32x32xf32>, vector<8x32xf32> -> vector<8x32xf32>
    %c0_40 = arith.constant 0 : index
    %c0_41 = arith.constant 0 : index
    %c0_42 = arith.constant 0 : index
    %56 = vector.load %arg14[%c0_40, %c0_41, %c0_42] : memref<3x1x32xf32, #tpu.memory_space<vmem>>, vector<1x1x32xf32>
    %57 = vector.shape_cast %56 : vector<1x1x32xf32> to vector<1x32xf32>
    %58 = vector.broadcast %57 : vector<1x32xf32> to vector<8x32xf32>
    %59 = arith.addf %55, %58 : vector<8x32xf32>
    %60 = arith.addf %52, %59 : vector<8x32xf32>
    %61 = arith.negf %60 : vector<8x32xf32>
    %62 = math.exp %61 : vector<8x32xf32>
    %cst_43 = arith.constant 1.000000e+00 : f32
    %63 = vector.broadcast %cst_43 : f32 to vector<8x32xf32>
    %64 = arith.addf %63, %62 : vector<8x32xf32>
    %65 = arith.divf %63, %64 : vector<8x32xf32>
    %c1 = arith.constant 1 : index
    %c0_44 = arith.constant 0 : index
    %c0_45 = arith.constant 0 : index
    %66 = vector.load %arg10[%c1, %c0_44, %c0_45] : memref<3x16x32xf32, #tpu.memory_space<vmem>>, vector<1x16x32xf32>
    %67 = vector.shape_cast %66 : vector<1x16x32xf32> to vector<16x32xf32>
    %cst_46 = arith.constant dense<0.000000e+00> : vector<8x32xf32>
    %68 = tpu.matmul %4, %67, %cst_46 {dimension_numbers = #tpu.dot_dimension_numbers<[1], [0], [0], [1], [0, 0, 1, 1], [], []>} : vector<8x16xf32>, vector<16x32xf32>, vector<8x32xf32> -> vector<8x32xf32>
    %c1_47 = arith.constant 1 : index
    %c0_48 = arith.constant 0 : index
    %c0_49 = arith.constant 0 : index
    %69 = vector.load %arg11[%c1_47, %c0_48, %c0_49] : memref<3x32x32xf32, #tpu.memory_space<vmem>>, vector<1x32x32xf32>
    %70 = vector.shape_cast %69 : vector<1x32x32xf32> to vector<32x32xf32>
    %cst_50 = arith.constant dense<0.000000e+00> : vector<8x32xf32>
    %71 = tpu.matmul %41, %70, %cst_50 {dimension_numbers = #tpu.dot_dimension_numbers<[1], [0], [0], [1], [0, 0, 1, 1], [], []>} : vector<8x32xf32>, vector<32x32xf32>, vector<8x32xf32> -> vector<8x32xf32>
    %72 = arith.addf %68, %71 : vector<8x32xf32>
    %c1_51 = arith.constant 1 : index
    %c0_52 = arith.constant 0 : index
    %c0_53 = arith.constant 0 : index
    %73 = vector.load %arg13[%c1_51, %c0_52, %c0_53] : memref<3x1x32xf32, #tpu.memory_space<vmem>>, vector<1x1x32xf32>
    %74 = vector.shape_cast %73 : vector<1x1x32xf32> to vector<1x32xf32>
    %75 = vector.broadcast %74 : vector<1x32xf32> to vector<8x32xf32>
    %76 = arith.addf %72, %75 : vector<8x32xf32>
    %c1_54 = arith.constant 1 : index
    %c0_55 = arith.constant 0 : index
    %c0_56 = arith.constant 0 : index
    %77 = vector.load %arg12[%c1_54, %c0_55, %c0_56] : memref<3x32x32xf32, #tpu.memory_space<vmem>>, vector<1x32x32xf32>
    %78 = vector.shape_cast %77 : vector<1x32x32xf32> to vector<32x32xf32>
    %cst_57 = arith.constant dense<0.000000e+00> : vector<8x32xf32>
    %79 = tpu.matmul %7, %78, %cst_57 {dimension_numbers = #tpu.dot_dimension_numbers<[1], [0], [0], [1], [0, 0, 1, 1], [], []>} : vector<8x32xf32>, vector<32x32xf32>, vector<8x32xf32> -> vector<8x32xf32>
    %c1_58 = arith.constant 1 : index
    %c0_59 = arith.constant 0 : index
    %c0_60 = arith.constant 0 : index
    %80 = vector.load %arg14[%c1_58, %c0_59, %c0_60] : memref<3x1x32xf32, #tpu.memory_space<vmem>>, vector<1x1x32xf32>
    %81 = vector.shape_cast %80 : vector<1x1x32xf32> to vector<1x32xf32>
    %82 = vector.broadcast %81 : vector<1x32xf32> to vector<8x32xf32>
    %83 = arith.addf %79, %82 : vector<8x32xf32>
    %84 = arith.addf %76, %83 : vector<8x32xf32>
    %85 = arith.negf %84 : vector<8x32xf32>
    %86 = math.exp %85 : vector<8x32xf32>
    %cst_61 = arith.constant 1.000000e+00 : f32
    %87 = vector.broadcast %cst_61 : f32 to vector<8x32xf32>
    %88 = arith.addf %87, %86 : vector<8x32xf32>
    %89 = arith.divf %87, %88 : vector<8x32xf32>
    %c2 = arith.constant 2 : index
    %c0_62 = arith.constant 0 : index
    %c0_63 = arith.constant 0 : index
    %90 = vector.load %arg10[%c2, %c0_62, %c0_63] : memref<3x16x32xf32, #tpu.memory_space<vmem>>, vector<1x16x32xf32>
    %91 = vector.shape_cast %90 : vector<1x16x32xf32> to vector<16x32xf32>
    %cst_64 = arith.constant dense<0.000000e+00> : vector<8x32xf32>
    %92 = tpu.matmul %4, %91, %cst_64 {dimension_numbers = #tpu.dot_dimension_numbers<[1], [0], [0], [1], [0, 0, 1, 1], [], []>} : vector<8x16xf32>, vector<16x32xf32>, vector<8x32xf32> -> vector<8x32xf32>
    %c2_65 = arith.constant 2 : index
    %c0_66 = arith.constant 0 : index
    %c0_67 = arith.constant 0 : index
    %93 = vector.load %arg11[%c2_65, %c0_66, %c0_67] : memref<3x32x32xf32, #tpu.memory_space<vmem>>, vector<1x32x32xf32>
    %94 = vector.shape_cast %93 : vector<1x32x32xf32> to vector<32x32xf32>
    %cst_68 = arith.constant dense<0.000000e+00> : vector<8x32xf32>
    %95 = tpu.matmul %41, %94, %cst_68 {dimension_numbers = #tpu.dot_dimension_numbers<[1], [0], [0], [1], [0, 0, 1, 1], [], []>} : vector<8x32xf32>, vector<32x32xf32>, vector<8x32xf32> -> vector<8x32xf32>
    %96 = arith.addf %92, %95 : vector<8x32xf32>
    %c2_69 = arith.constant 2 : index
    %c0_70 = arith.constant 0 : index
    %c0_71 = arith.constant 0 : index
    %97 = vector.load %arg13[%c2_69, %c0_70, %c0_71] : memref<3x1x32xf32, #tpu.memory_space<vmem>>, vector<1x1x32xf32>
    %98 = vector.shape_cast %97 : vector<1x1x32xf32> to vector<1x32xf32>
    %99 = vector.broadcast %98 : vector<1x32xf32> to vector<8x32xf32>
    %100 = arith.addf %96, %99 : vector<8x32xf32>
    %c2_72 = arith.constant 2 : index
    %c0_73 = arith.constant 0 : index
    %c0_74 = arith.constant 0 : index
    %101 = vector.load %arg12[%c2_72, %c0_73, %c0_74] : memref<3x32x32xf32, #tpu.memory_space<vmem>>, vector<1x32x32xf32>
    %102 = vector.shape_cast %101 : vector<1x32x32xf32> to vector<32x32xf32>
    %cst_75 = arith.constant dense<0.000000e+00> : vector<8x32xf32>
    %103 = tpu.matmul %7, %102, %cst_75 {dimension_numbers = #tpu.dot_dimension_numbers<[1], [0], [0], [1], [0, 0, 1, 1], [], []>} : vector<8x32xf32>, vector<32x32xf32>, vector<8x32xf32> -> vector<8x32xf32>
    %c2_76 = arith.constant 2 : index
    %c0_77 = arith.constant 0 : index
    %c0_78 = arith.constant 0 : index
    %104 = vector.load %arg14[%c2_76, %c0_77, %c0_78] : memref<3x1x32xf32, #tpu.memory_space<vmem>>, vector<1x1x32xf32>
    %105 = vector.shape_cast %104 : vector<1x1x32xf32> to vector<1x32xf32>
    %106 = vector.broadcast %105 : vector<1x32xf32> to vector<8x32xf32>
    %107 = arith.addf %103, %106 : vector<8x32xf32>
    %108 = arith.mulf %65, %107 : vector<8x32xf32>
    %109 = arith.addf %100, %108 : vector<8x32xf32>
    %110 = math.tanh %109 : vector<8x32xf32>
    %cst_79 = arith.constant 1.000000e+00 : f32
    %111 = vector.broadcast %cst_79 : f32 to vector<8x32xf32>
    %112 = arith.subf %111, %89 : vector<8x32xf32>
    %113 = arith.mulf %112, %110 : vector<8x32xf32>
    %114 = arith.mulf %89, %7 : vector<8x32xf32>
    %115 = arith.addf %113, %114 : vector<8x32xf32>
    %c0_80 = arith.constant 0 : index
    %c0_81 = arith.constant 0 : index
    %c0_82 = arith.constant 0 : index
    %116 = vector.load %arg15[%c0_80, %c0_81, %c0_82] : memref<3x32x32xf32, #tpu.memory_space<vmem>>, vector<1x32x32xf32>
    %117 = vector.shape_cast %116 : vector<1x32x32xf32> to vector<32x32xf32>
    %cst_83 = arith.constant dense<0.000000e+00> : vector<8x32xf32>
    %118 = tpu.matmul %115, %117, %cst_83 {dimension_numbers = #tpu.dot_dimension_numbers<[1], [0], [0], [1], [0, 0, 1, 1], [], []>} : vector<8x32xf32>, vector<32x32xf32>, vector<8x32xf32> -> vector<8x32xf32>
    %c0_84 = arith.constant 0 : index
    %c0_85 = arith.constant 0 : index
    %c0_86 = arith.constant 0 : index
    %119 = vector.load %arg16[%c0_84, %c0_85, %c0_86] : memref<3x32x32xf32, #tpu.memory_space<vmem>>, vector<1x32x32xf32>
    %120 = vector.shape_cast %119 : vector<1x32x32xf32> to vector<32x32xf32>
    %cst_87 = arith.constant dense<0.000000e+00> : vector<8x32xf32>
    %121 = tpu.matmul %41, %120, %cst_87 {dimension_numbers = #tpu.dot_dimension_numbers<[1], [0], [0], [1], [0, 0, 1, 1], [], []>} : vector<8x32xf32>, vector<32x32xf32>, vector<8x32xf32> -> vector<8x32xf32>
    %122 = arith.addf %118, %121 : vector<8x32xf32>
    %c0_88 = arith.constant 0 : index
    %c0_89 = arith.constant 0 : index
    %c0_90 = arith.constant 0 : index
    %123 = vector.load %arg18[%c0_88, %c0_89, %c0_90] : memref<3x1x32xf32, #tpu.memory_space<vmem>>, vector<1x1x32xf32>
    %124 = vector.shape_cast %123 : vector<1x1x32xf32> to vector<1x32xf32>
    %125 = vector.broadcast %124 : vector<1x32xf32> to vector<8x32xf32>
    %126 = arith.addf %122, %125 : vector<8x32xf32>
    %c0_91 = arith.constant 0 : index
    %c0_92 = arith.constant 0 : index
    %c0_93 = arith.constant 0 : index
    %127 = vector.load %arg17[%c0_91, %c0_92, %c0_93] : memref<3x32x32xf32, #tpu.memory_space<vmem>>, vector<1x32x32xf32>
    %128 = vector.shape_cast %127 : vector<1x32x32xf32> to vector<32x32xf32>
    %cst_94 = arith.constant dense<0.000000e+00> : vector<8x32xf32>
    %129 = tpu.matmul %8, %128, %cst_94 {dimension_numbers = #tpu.dot_dimension_numbers<[1], [0], [0], [1], [0, 0, 1, 1], [], []>} : vector<8x32xf32>, vector<32x32xf32>, vector<8x32xf32> -> vector<8x32xf32>
    %c0_95 = arith.constant 0 : index
    %c0_96 = arith.constant 0 : index
    %c0_97 = arith.constant 0 : index
    %130 = vector.load %arg19[%c0_95, %c0_96, %c0_97] : memref<3x1x32xf32, #tpu.memory_space<vmem>>, vector<1x1x32xf32>
    %131 = vector.shape_cast %130 : vector<1x1x32xf32> to vector<1x32xf32>
    %132 = vector.broadcast %131 : vector<1x32xf32> to vector<8x32xf32>
    %133 = arith.addf %129, %132 : vector<8x32xf32>
    %134 = arith.addf %126, %133 : vector<8x32xf32>
    %135 = arith.negf %134 : vector<8x32xf32>
    %136 = math.exp %135 : vector<8x32xf32>
    %cst_98 = arith.constant 1.000000e+00 : f32
    %137 = vector.broadcast %cst_98 : f32 to vector<8x32xf32>
    %138 = arith.addf %137, %136 : vector<8x32xf32>
    %139 = arith.divf %137, %138 : vector<8x32xf32>
    %c1_99 = arith.constant 1 : index
    %c0_100 = arith.constant 0 : index
    %c0_101 = arith.constant 0 : index
    %140 = vector.load %arg15[%c1_99, %c0_100, %c0_101] : memref<3x32x32xf32, #tpu.memory_space<vmem>>, vector<1x32x32xf32>
    %141 = vector.shape_cast %140 : vector<1x32x32xf32> to vector<32x32xf32>
    %cst_102 = arith.constant dense<0.000000e+00> : vector<8x32xf32>
    %142 = tpu.matmul %115, %141, %cst_102 {dimension_numbers = #tpu.dot_dimension_numbers<[1], [0], [0], [1], [0, 0, 1, 1], [], []>} : vector<8x32xf32>, vector<32x32xf32>, vector<8x32xf32> -> vector<8x32xf32>
    %c1_103 = arith.constant 1 : index
    %c0_104 = arith.constant 0 : index
    %c0_105 = arith.constant 0 : index
    %143 = vector.load %arg16[%c1_103, %c0_104, %c0_105] : memref<3x32x32xf32, #tpu.memory_space<vmem>>, vector<1x32x32xf32>
    %144 = vector.shape_cast %143 : vector<1x32x32xf32> to vector<32x32xf32>
    %cst_106 = arith.constant dense<0.000000e+00> : vector<8x32xf32>
    %145 = tpu.matmul %41, %144, %cst_106 {dimension_numbers = #tpu.dot_dimension_numbers<[1], [0], [0], [1], [0, 0, 1, 1], [], []>} : vector<8x32xf32>, vector<32x32xf32>, vector<8x32xf32> -> vector<8x32xf32>
    %146 = arith.addf %142, %145 : vector<8x32xf32>
    %c1_107 = arith.constant 1 : index
    %c0_108 = arith.constant 0 : index
    %c0_109 = arith.constant 0 : index
    %147 = vector.load %arg18[%c1_107, %c0_108, %c0_109] : memref<3x1x32xf32, #tpu.memory_space<vmem>>, vector<1x1x32xf32>
    %148 = vector.shape_cast %147 : vector<1x1x32xf32> to vector<1x32xf32>
    %149 = vector.broadcast %148 : vector<1x32xf32> to vector<8x32xf32>
    %150 = arith.addf %146, %149 : vector<8x32xf32>
    %c1_110 = arith.constant 1 : index
    %c0_111 = arith.constant 0 : index
    %c0_112 = arith.constant 0 : index
    %151 = vector.load %arg17[%c1_110, %c0_111, %c0_112] : memref<3x32x32xf32, #tpu.memory_space<vmem>>, vector<1x32x32xf32>
    %152 = vector.shape_cast %151 : vector<1x32x32xf32> to vector<32x32xf32>
    %cst_113 = arith.constant dense<0.000000e+00> : vector<8x32xf32>
    %153 = tpu.matmul %8, %152, %cst_113 {dimension_numbers = #tpu.dot_dimension_numbers<[1], [0], [0], [1], [0, 0, 1, 1], [], []>} : vector<8x32xf32>, vector<32x32xf32>, vector<8x32xf32> -> vector<8x32xf32>
    %c1_114 = arith.constant 1 : index
    %c0_115 = arith.constant 0 : index
    %c0_116 = arith.constant 0 : index
    %154 = vector.load %arg19[%c1_114, %c0_115, %c0_116] : memref<3x1x32xf32, #tpu.memory_space<vmem>>, vector<1x1x32xf32>
    %155 = vector.shape_cast %154 : vector<1x1x32xf32> to vector<1x32xf32>
    %156 = vector.broadcast %155 : vector<1x32xf32> to vector<8x32xf32>
    %157 = arith.addf %153, %156 : vector<8x32xf32>
    %158 = arith.addf %150, %157 : vector<8x32xf32>
    %159 = arith.negf %158 : vector<8x32xf32>
    %160 = math.exp %159 : vector<8x32xf32>
    %cst_117 = arith.constant 1.000000e+00 : f32
    %161 = vector.broadcast %cst_117 : f32 to vector<8x32xf32>
    %162 = arith.addf %161, %160 : vector<8x32xf32>
    %163 = arith.divf %161, %162 : vector<8x32xf32>
    %c2_118 = arith.constant 2 : index
    %c0_119 = arith.constant 0 : index
    %c0_120 = arith.constant 0 : index
    %164 = vector.load %arg15[%c2_118, %c0_119, %c0_120] : memref<3x32x32xf32, #tpu.memory_space<vmem>>, vector<1x32x32xf32>
    %165 = vector.shape_cast %164 : vector<1x32x32xf32> to vector<32x32xf32>
    %cst_121 = arith.constant dense<0.000000e+00> : vector<8x32xf32>
    %166 = tpu.matmul %115, %165, %cst_121 {dimension_numbers = #tpu.dot_dimension_numbers<[1], [0], [0], [1], [0, 0, 1, 1], [], []>} : vector<8x32xf32>, vector<32x32xf32>, vector<8x32xf32> -> vector<8x32xf32>
    %c2_122 = arith.constant 2 : index
    %c0_123 = arith.constant 0 : index
    %c0_124 = arith.constant 0 : index
    %167 = vector.load %arg16[%c2_122, %c0_123, %c0_124] : memref<3x32x32xf32, #tpu.memory_space<vmem>>, vector<1x32x32xf32>
    %168 = vector.shape_cast %167 : vector<1x32x32xf32> to vector<32x32xf32>
    %cst_125 = arith.constant dense<0.000000e+00> : vector<8x32xf32>
    %169 = tpu.matmul %41, %168, %cst_125 {dimension_numbers = #tpu.dot_dimension_numbers<[1], [0], [0], [1], [0, 0, 1, 1], [], []>} : vector<8x32xf32>, vector<32x32xf32>, vector<8x32xf32> -> vector<8x32xf32>
    %170 = arith.addf %166, %169 : vector<8x32xf32>
    %c2_126 = arith.constant 2 : index
    %c0_127 = arith.constant 0 : index
    %c0_128 = arith.constant 0 : index
    %171 = vector.load %arg18[%c2_126, %c0_127, %c0_128] : memref<3x1x32xf32, #tpu.memory_space<vmem>>, vector<1x1x32xf32>
    %172 = vector.shape_cast %171 : vector<1x1x32xf32> to vector<1x32xf32>
    %173 = vector.broadcast %172 : vector<1x32xf32> to vector<8x32xf32>
    %174 = arith.addf %170, %173 : vector<8x32xf32>
    %c2_129 = arith.constant 2 : index
    %c0_130 = arith.constant 0 : index
    %c0_131 = arith.constant 0 : index
    %175 = vector.load %arg17[%c2_129, %c0_130, %c0_131] : memref<3x32x32xf32, #tpu.memory_space<vmem>>, vector<1x32x32xf32>
    %176 = vector.shape_cast %175 : vector<1x32x32xf32> to vector<32x32xf32>
    %cst_132 = arith.constant dense<0.000000e+00> : vector<8x32xf32>
    %177 = tpu.matmul %8, %176, %cst_132 {dimension_numbers = #tpu.dot_dimension_numbers<[1], [0], [0], [1], [0, 0, 1, 1], [], []>} : vector<8x32xf32>, vector<32x32xf32>, vector<8x32xf32> -> vector<8x32xf32>
    %c2_133 = arith.constant 2 : index
    %c0_134 = arith.constant 0 : index
    %c0_135 = arith.constant 0 : index
    %178 = vector.load %arg19[%c2_133, %c0_134, %c0_135] : memref<3x1x32xf32, #tpu.memory_space<vmem>>, vector<1x1x32xf32>
    %179 = vector.shape_cast %178 : vector<1x1x32xf32> to vector<1x32xf32>
    %180 = vector.broadcast %179 : vector<1x32xf32> to vector<8x32xf32>
    %181 = arith.addf %177, %180 : vector<8x32xf32>
    %182 = arith.mulf %139, %181 : vector<8x32xf32>
    %183 = arith.addf %174, %182 : vector<8x32xf32>
    %184 = math.tanh %183 : vector<8x32xf32>
    %cst_136 = arith.constant 1.000000e+00 : f32
    %185 = vector.broadcast %cst_136 : f32 to vector<8x32xf32>
    %186 = arith.subf %185, %163 : vector<8x32xf32>
    %187 = arith.mulf %186, %184 : vector<8x32xf32>
    %188 = arith.mulf %163, %8 : vector<8x32xf32>
    %189 = arith.addf %187, %188 : vector<8x32xf32>
    %c0_137 = arith.constant 0 : index
    %c0_138 = arith.constant 0 : index
    %190 = vector.load %arg20[%c0_137, %c0_138] : memref<32x64xf32, #tpu.memory_space<vmem>>, vector<32x64xf32>
    %cst_139 = arith.constant dense<0.000000e+00> : vector<8x64xf32>
    %191 = tpu.matmul %189, %190, %cst_139 {dimension_numbers = #tpu.dot_dimension_numbers<[1], [0], [0], [1], [0, 0, 1, 1], [], []>} : vector<8x32xf32>, vector<32x64xf32>, vector<8x64xf32> -> vector<8x64xf32>
    %c0_140 = arith.constant 0 : index
    %c0_141 = arith.constant 0 : index
    %192 = vector.load %arg21[%c0_140, %c0_141] : memref<32x64xf32, #tpu.memory_space<vmem>>, vector<32x64xf32>
    %cst_142 = arith.constant dense<0.000000e+00> : vector<8x64xf32>
    %193 = tpu.matmul %41, %192, %cst_142 {dimension_numbers = #tpu.dot_dimension_numbers<[1], [0], [0], [1], [0, 0, 1, 1], [], []>} : vector<8x32xf32>, vector<32x64xf32>, vector<8x64xf32> -> vector<8x64xf32>
    %194 = arith.addf %191, %193 : vector<8x64xf32>
    %c0_143 = arith.constant 0 : index
    %c0_144 = arith.constant 0 : index
    %195 = vector.load %arg22[%c0_143, %c0_144] : memref<16x64xf32, #tpu.memory_space<vmem>>, vector<16x64xf32>
    %cst_145 = arith.constant dense<0.000000e+00> : vector<8x64xf32>
    %196 = tpu.matmul %4, %195, %cst_145 {dimension_numbers = #tpu.dot_dimension_numbers<[1], [0], [0], [1], [0, 0, 1, 1], [], []>} : vector<8x16xf32>, vector<16x64xf32>, vector<8x64xf32> -> vector<8x64xf32>
    %197 = arith.addf %194, %196 : vector<8x64xf32>
    %c0_146 = arith.constant 0 : index
    %c0_147 = arith.constant 0 : index
    %198 = vector.load %arg23[%c0_146, %c0_147] : memref<1x64xf32, #tpu.memory_space<vmem>>, vector<1x64xf32>
    %199 = vector.broadcast %198 : vector<1x64xf32> to vector<8x64xf32>
    %200 = arith.addf %197, %199 : vector<8x64xf32>
    %c0_148 = arith.constant 0 : index
    %c0_149 = arith.constant 0 : index
    %201 = vector.load %arg25[%c0_148, %c0_149] : memref<8x32xf32, #tpu.memory_space<vmem>>, vector<8x32xf32>
    tpu.vector_store %arg25[%c0_148, %c0_149], %115 {strides = array<i32>} : memref<8x32xf32, #tpu.memory_space<vmem>>, vector<8x32xf32>,
    %c0_150 = arith.constant 0 : index
    %c0_151 = arith.constant 0 : index
    %202 = vector.load %arg26[%c0_150, %c0_151] : memref<8x32xf32, #tpu.memory_space<vmem>>, vector<8x32xf32>
    tpu.vector_store %arg26[%c0_150, %c0_151], %189 {strides = array<i32>} : memref<8x32xf32, #tpu.memory_space<vmem>>, vector<8x32xf32>,
    %203 = tpu.concatenate %200, %115, %189 in 1 : vector<8x64xf32>, vector<8x32xf32>, vector<8x32xf32> -> vector<8x128xf32>
    %c0_152 = arith.constant 0 : index
    %c0_153 = arith.constant 0 : index
    %c0_154 = arith.constant 0 : index
    %204 = vector.load %arg24[%c0_152, %c0_153, %c0_154] : memref<1x8x128xf32, #tpu.memory_space<vmem>>, vector<1x8x128xf32>
    %205 = vector.shape_cast %204 : vector<1x8x128xf32> to vector<8x128xf32>
    %206 = vector.shape_cast %203 : vector<8x128xf32> to vector<1x8x128xf32>
    tpu.vector_store %arg24[%c0_152, %c0_153, %c0_154], %206 {strides = array<i32>} : memref<1x8x128xf32, #tpu.memory_space<vmem>>, vector<1x8x128xf32>,
    return
  }
  func.func @transform_0(%arg0: i32) -> (i32, i32, i32) {
    %c0_i32 = arith.constant 0 : i32
    %c0_i32_0 = arith.constant 0 : i32
    %c0_i32_1 = arith.constant 0 : i32
    return %arg0, %c0_i32, %c0_i32_0 : i32, i32, i32
  }
  func.func @transform_1(%arg0: i32) -> (i32, i32, i32) {
    %c0_i32 = arith.constant 0 : i32
    %c0_i32_0 = arith.constant 0 : i32
    %c0_i32_1 = arith.constant 0 : i32
    %c0_i32_2 = arith.constant 0 : i32
    return %c0_i32, %c0_i32_0, %c0_i32_1 : i32, i32, i32
  }
  func.func @transform_2(%arg0: i32) -> (i32, i32) {
    %c0_i32 = arith.constant 0 : i32
    %c0_i32_0 = arith.constant 0 : i32
    %c0_i32_1 = arith.constant 0 : i32
    return %c0_i32, %c0_i32_0 : i32, i32
  }
  func.func @transform_3(%arg0: i32) -> (i32, i32) {
    %c0_i32 = arith.constant 0 : i32
    %c0_i32_0 = arith.constant 0 : i32
    %c0_i32_1 = arith.constant 0 : i32
    return %c0_i32, %c0_i32_0 : i32, i32
  }
  func.func @transform_4(%arg0: i32) -> (i32, i32) {
    %c0_i32 = arith.constant 0 : i32
    %c0_i32_0 = arith.constant 0 : i32
    %c0_i32_1 = arith.constant 0 : i32
    return %c0_i32, %c0_i32_0 : i32, i32
  }
  func.func @transform_5(%arg0: i32) -> (i32, i32) {
    %c0_i32 = arith.constant 0 : i32
    %c0_i32_0 = arith.constant 0 : i32
    %c0_i32_1 = arith.constant 0 : i32
    return %c0_i32, %c0_i32_0 : i32, i32
  }
  func.func @transform_6(%arg0: i32) -> (i32, i32) {
    %c0_i32 = arith.constant 0 : i32
    %c0_i32_0 = arith.constant 0 : i32
    %c0_i32_1 = arith.constant 0 : i32
    return %c0_i32, %c0_i32_0 : i32, i32
  }
  func.func @transform_7(%arg0: i32) -> (i32, i32) {
    %c0_i32 = arith.constant 0 : i32
    %c0_i32_0 = arith.constant 0 : i32
    %c0_i32_1 = arith.constant 0 : i32
    return %c0_i32, %c0_i32_0 : i32, i32
  }
  func.func @transform_8(%arg0: i32) -> (i32, i32) {
    %c0_i32 = arith.constant 0 : i32
    %c0_i32_0 = arith.constant 0 : i32
    %c0_i32_1 = arith.constant 0 : i32
    return %c0_i32, %c0_i32_0 : i32, i32
  }
  func.func @transform_9(%arg0: i32) -> (i32, i32, i32) {
    %c0_i32 = arith.constant 0 : i32
    %c0_i32_0 = arith.constant 0 : i32
    %c0_i32_1 = arith.constant 0 : i32
    %c0_i32_2 = arith.constant 0 : i32
    return %c0_i32, %c0_i32_0, %c0_i32_1 : i32, i32, i32
  }
  func.func @transform_10(%arg0: i32) -> (i32, i32, i32) {
    %c0_i32 = arith.constant 0 : i32
    %c0_i32_0 = arith.constant 0 : i32
    %c0_i32_1 = arith.constant 0 : i32
    %c0_i32_2 = arith.constant 0 : i32
    return %c0_i32, %c0_i32_0, %c0_i32_1 : i32, i32, i32
  }
  func.func @transform_11(%arg0: i32) -> (i32, i32, i32) {
    %c0_i32 = arith.constant 0 : i32
    %c0_i32_0 = arith.constant 0 : i32
    %c0_i32_1 = arith.constant 0 : i32
    %c0_i32_2 = arith.constant 0 : i32
    return %c0_i32, %c0_i32_0, %c0_i32_1 : i32, i32, i32
  }
  func.func @transform_12(%arg0: i32) -> (i32, i32, i32) {
    %c0_i32 = arith.constant 0 : i32
    %c0_i32_0 = arith.constant 0 : i32
    %c0_i32_1 = arith.constant 0 : i32
    %c0_i32_2 = arith.constant 0 : i32
    return %c0_i32, %c0_i32_0, %c0_i32_1 : i32, i32, i32
  }
  func.func @transform_13(%arg0: i32) -> (i32, i32, i32) {
    %c0_i32 = arith.constant 0 : i32
    %c0_i32_0 = arith.constant 0 : i32
    %c0_i32_1 = arith.constant 0 : i32
    %c0_i32_2 = arith.constant 0 : i32
    return %c0_i32, %c0_i32_0, %c0_i32_1 : i32, i32, i32
  }
  func.func @transform_14(%arg0: i32) -> (i32, i32, i32) {
    %c0_i32 = arith.constant 0 : i32
    %c0_i32_0 = arith.constant 0 : i32
    %c0_i32_1 = arith.constant 0 : i32
    %c0_i32_2 = arith.constant 0 : i32
    return %c0_i32, %c0_i32_0, %c0_i32_1 : i32, i32, i32
  }
  func.func @transform_15(%arg0: i32) -> (i32, i32, i32) {
    %c0_i32 = arith.constant 0 : i32
    %c0_i32_0 = arith.constant 0 : i32
    %c0_i32_1 = arith.constant 0 : i32
    %c0_i32_2 = arith.constant 0 : i32
    return %c0_i32, %c0_i32_0, %c0_i32_1 : i32, i32, i32
  }
  func.func @transform_16(%arg0: i32) -> (i32, i32, i32) {
    %c0_i32 = arith.constant 0 : i32
    %c0_i32_0 = arith.constant 0 : i32
    %c0_i32_1 = arith.constant 0 : i32
    %c0_i32_2 = arith.constant 0 : i32
    return %c0_i32, %c0_i32_0, %c0_i32_1 : i32, i32, i32
  }
  func.func @transform_17(%arg0: i32) -> (i32, i32, i32) {
    %c0_i32 = arith.constant 0 : i32
    %c0_i32_0 = arith.constant 0 : i32
    %c0_i32_1 = arith.constant 0 : i32
    %c0_i32_2 = arith.constant 0 : i32
    return %c0_i32, %c0_i32_0, %c0_i32_1 : i32, i32, i32
  }
  func.func @transform_18(%arg0: i32) -> (i32, i32, i32) {
    %c0_i32 = arith.constant 0 : i32
    %c0_i32_0 = arith.constant 0 : i32
    %c0_i32_1 = arith.constant 0 : i32
    %c0_i32_2 = arith.constant 0 : i32
    return %c0_i32, %c0_i32_0, %c0_i32_1 : i32, i32, i32
  }
  func.func @transform_19(%arg0: i32) -> (i32, i32) {
    %c0_i32 = arith.constant 0 : i32
    %c0_i32_0 = arith.constant 0 : i32
    %c0_i32_1 = arith.constant 0 : i32
    return %c0_i32, %c0_i32_0 : i32, i32
  }
  func.func @transform_20(%arg0: i32) -> (i32, i32) {
    %c0_i32 = arith.constant 0 : i32
    %c0_i32_0 = arith.constant 0 : i32
    %c0_i32_1 = arith.constant 0 : i32
    return %c0_i32, %c0_i32_0 : i32, i32
  }
  func.func @transform_21(%arg0: i32) -> (i32, i32) {
    %c0_i32 = arith.constant 0 : i32
    %c0_i32_0 = arith.constant 0 : i32
    %c0_i32_1 = arith.constant 0 : i32
    return %c0_i32, %c0_i32_0 : i32, i32
  }
  func.func @transform_22(%arg0: i32) -> (i32, i32) {
    %c0_i32 = arith.constant 0 : i32
    %c0_i32_0 = arith.constant 0 : i32
    %c0_i32_1 = arith.constant 0 : i32
    return %c0_i32, %c0_i32_0 : i32, i32
  }
  func.func @transform_23(%arg0: i32) -> (i32, i32, i32) {
    %c0_i32 = arith.constant 0 : i32
    %c0_i32_0 = arith.constant 0 : i32
    %c0_i32_1 = arith.constant 0 : i32
    return %arg0, %c0_i32, %c0_i32_0 : i32, i32, i32
  }
}

</mosaic_0001>

<bundles_post_ra>
// kernel: lstm_decoder_decode.1
= control target key start
LH: loop header
LB: loop body
LE: loop exit
PB: predicated region body
PF: predicated region fallthrough
CT: control target
= control target key end

     0   :  { %s4852_s0 = inlined_call_operand.vmem [shape: f32[5,8,16], index: 0, kind: input, shape index: {}]   ;;  %s4853_s1 = inlined_call_operand.vmem [shape: f32[8,8,32], index: 1, kind: input, shape index: {}]   ;;  %s4854_s2 = inlined_call_operand.vmem [shape: f32[8,8], index: 2, kind: input, shape index: {}]   ;;  %s4855_s3 = inlined_call_operand.vmem [shape: f32[8,32], index: 3, kind: input, shape index: {}]   ;;  %s4856_s4 = inlined_call_operand.vmem [shape: f32[8,32], index: 4, kind: input, shape index: {}]   ;;  %s4857_s5 = inlined_call_operand.vmem [shape: f32[32,32], index: 5, kind: input, shape index: {}]   ;;  %s4858_s6 = inlined_call_operand.vmem [shape: f32[32,32], index: 6, kind: input, shape index: {}]   ;;  %s4859_s7 = inlined_call_operand.vmem [shape: f32[1,32], index: 7, kind: input, shape index: {}]   ;;  %s4860_s8 = inlined_call_operand.vmem [shape: f32[1,32], index: 8, kind: input, shape index: {}]   ;;  %s4861_s9 = inlined_call_operand.vmem [shape: f32[3,16,32], index: 9, kind: input, shape index: {}]   ;;  %s4862_s10 = inlined_call_operand.vmem [shape: f32[3,32,32], index: 10, kind: input, shape index: {}]   ;;  %s4863_s11 = inlined_call_operand.vmem [shape: f32[3,32,32], index: 11, kind: input, shape index: {}]   ;;  %s4864_s12 = inlined_call_operand.vmem [shape: f32[3,1,32], index: 12, kind: input, shape index: {}]   ;;  %s4865_s13 = inlined_call_operand.vmem [shape: f32[3,1,32], index: 13, kind: input, shape index: {}]   ;;  %s4866_s14 = inlined_call_operand.vmem [shape: f32[3,32,32], index: 14, kind: input, shape index: {}]   ;;  %s4867_s15 = inlined_call_operand.vmem [shape: f32[3,32,32], index: 15, kind: input, shape index: {}]   ;;  %s4868_s16 = inlined_call_operand.vmem [shape: f32[3,32,32], index: 16, kind: input, shape index: {}]   ;;  %s4869_s17 = inlined_call_operand.vmem [shape: f32[3,1,32], index: 17, kind: input, shape index: {}]   ;;  %s4870_s18 = inlined_call_operand.vmem [shape: f32[3,1,32], index: 18, kind: input, shape index: {}]   ;;  %s4871_s19 = inlined_call_operand.vmem [shape: f32[32,64], index: 19, kind: input, shape index: {}]   ;;  %s4872_s20 = inlined_call_operand.vmem [shape: f32[32,64], index: 20, kind: input, shape index: {}]   ;;  %s4873_s21 = inlined_call_operand.vmem [shape: f32[16,64], index: 21, kind: input, shape index: {}]   ;;  %s4874_s22 = inlined_call_operand.vmem [shape: f32[1,64], index: 22, kind: input, shape index: {}]   ;;  %s4875_s23 = inlined_call_operand.vmem [shape: f32[5,8,128], index: 23, kind: output, shape index: {}]  }
   0x1   :  { %4880 = sst [smem:[#allocation5_spill]] %s4852_s0 }
   0x2   :  { %4881 = sst [smem:[#allocation6_spill]] %s4853_s1 }
   0x3   :  { %4882 = sst [smem:[#allocation7_spill]] %s4854_s2 }
   0x4   :  { %4883 = sst [smem:[#allocation8_spill]] %s4855_s3 }
   0x5   :  { %4884 = sst [smem:[#allocation9_spill]] %s4856_s4  ;;  %s4175_s4 = smov 0  }
   0x6   :  { %4885 = sst [smem:[#allocation10_spill]] %s4857_s5 }
   0x7   :  { %4886 = sst [smem:[#allocation11_spill]] %s4858_s6 }
   0x8   :  { %4887 = sst [smem:[#allocation12_spill]] %s4859_s7 }
   0x9   :  { %4888 = sst [smem:[#allocation13_spill]] %s4860_s8 }
   0xa LB: > { %4889 = sst [smem:[#allocation4_spill]] %s4046_s4  ;;  %s3345_s30 = sadd.s32 4294967295, %s4046_s4   ;;  %s4046_s4 = sphi %s4175_s4, %s33_s4  }
   0xb   : > { %p3349_p0 = scmp.ge.s32.totalorder %s4046_s4, 1  ;;  %p636_p1 = scmp.lt.s32.totalorder %s4046_s4, 6 }
   0xd   : > { %p637_p2 = pnand %p3349_p0, %p636_p1 }
   0xe   : > { %p698_p3 = scmp.lt.s32.totalorder (!%p637_p2), %s3345_s30, 4  ;;  %s4890_s26 = sld [smem:[#allocation5_spill]] (!%p637_p2) }
   0xf   : > { %640 = sbr.rel (%p637_p2) target bundleno = 1986 (0x7c2), region = 112  ;;  %p3352_p4 = scmp.ne.s32.totalorder (!%p637_p2), %s3345_s30, 0 }
  0x16   : > { %s699_s24 = scalar_select %p698_p3, %s3345_s30, 4 }
  0x17   : > { %709 = sbr.rel (%p3352_p4) target bundleno = 32 (0x20), region = 116  ;;  %s4891_s3 = sld [smem:[#allocation8_spill]] (!%p3352_p4)  ;;  %vm711_vm0 = vcmask (!%p3352_p4), 261120  }
  0x18   : > { %s3350_s25 = sshll.u32 %s699_s24, 3  ;;  %s4892_s24 = sld [smem:[#allocation9_spill]] (!%p3352_p4) }
  0x19   : > { %s4186_s2 = scalar_lea.vmem %s4890_s26, %s3350_s25  ;;  %s4191_s7 = scalar_lea.vmem %s4875_s23, %s3350_s25 }
  0x1d   : > { %v710_v0 = vld [vmem:[%s4891_s3] sm:$0xff] (!%p3352_p4) }
  0x1e   : > { %v713_v1 = vld [vmem:[%s4892_s24] sm:$0xff]  ;;  %712 = vst.msk [vmem:[#allocation2] sm:$0xff] %vm711_vm0, %v710_v0 }
  0x1f   : > { %714 = vst.msk [vmem:[#allocation3] sm:$0xff] %vm711_vm0, %v713_v1 }
  0x20 PF: > { %s4893_s26 = sld [smem:[#allocation10_spill]]  ;;  %s4894_s28 = sld [smem:[#allocation11_spill]]  ;;  %v950_v5 = vlaneseq  ;;  %v4048_v6 = vmov 0.0|0.0   ;;  %vm4049_vm1 = vmmov 0   ;;  %v4050_v11 = vmov 0.0  }
  0x21   : > { %3816 = vmatprep.subr.bf16.mxu0 %v4048_v6  ;;  %3578 = vmatprep.mubr.msk.f32.mxu0 %vm4049_vm1, %v4050_v11  ;;  %vm738_vm2 = vcmask 261120   ;;  %s4895_s29 = sld [smem:[#allocation6_spill]]  ;;  %s4896_s24 = sld [smem:[#allocation7_spill]]  ;;  %v4051_v40 = vmov 1966171168   ;;  %vm1229_vm3 = vcmask 1041409  }
  0x22   : > { %v4227_v15 = vshrl.u32 %v950_v5, 7  ;;  %v948_v41 = vunpack.c.l.s4 %v4051_v40  ;;  %s4897_s4 = sld [smem:[#allocation12_spill]]  ;;  %s4898_s8 = sld [smem:[#allocation13_spill]]  ;;  %vm1231_vm4 = vcmask 1042434   ;;  %vm1233_vm5 = vcmask 1043459  }
  0x23   : > { %vm1235_vm6 = vcmask 1044484   ;;  %vm1237_vm7 = vcmask 1045509   ;;  %vm1239_vm8 = vcmask 1046534   ;;  %vm1241_vm9 = vcmask 1047559   ;;  %s4053_s25 = smov 64  }
  0x24   : > { %v4236_v19 = vsub.s32 1, %v4227_v15  ;;  %v4239_v20 = vsub.s32 2, %v4227_v15  ;;  %v4249_v22 = vsub.s32 0, %v4227_v15  ;;  %v4252_v23 = vsub.s32 4, %v4227_v15 }
  0x25   : > { %v4263_v28 = vsub.s32 3, %v4227_v15  ;;  %v4288_v33 = vsub.s32 5, %v4227_v15  ;;  %v949_v42 = vunpack.c.0.s8 %v948_v41  ;;  %vm1244_vm10 = vcmask 64512  }
  0x26   : > { %v727_v2 = vld [vmem:[%s4893_s26] sm:$0xff]  ;;  %v728_v3 = vld [vmem:[%s4893_s26 + $0x8] sm:$0xff]  ;;  %v729_v9 = vld [vmem:[%s4893_s26 + $0x10] sm:$0xff]  ;;  %vm1635_vm11 = vcmask 130048   ;;  %vm3287_vm12 = vcmask 523264   ;;  %vm3289_vm13 = vcmask 785408  }
  0x27   : > { %v812_v4 = vld [vmem:[%s4894_s28] sm:$0xff]  ;;  %v3817_v7 = vpack.c.bf16 %v728_v3, %v727_v2  ;;  %v813_v8 = vld [vmem:[%s4894_s28 + $0x8] sm:$0xff]  ;;  %v730_v10 = vld [vmem:[%s4893_s26 + $0x18] sm:$0xff]  ;;  %v952_v44 = vsub.s32 %v949_v42, %v4227_v15 }
  0x28   : > { %v3822_v12 = vpack.c.bf16 %v813_v8, %v812_v4  ;;  %v814_v13 = vld [vmem:[%s4894_s28 + $0x10] sm:$0xff]  ;;  %v815_v14 = vld [vmem:[%s4894_s28 + $0x18] sm:$0xff]  ;;  %v3820_v16 = vpack.c.bf16 %v730_v10, %v729_v9  ;;  %v4232_v18 = vld [vmem:[%s4895_s29] sm:$0xff] }
  0x29   : > { %3818 = vmatpush3.bf16.msra.mxu0 %v3817_v7  ;;  %v3826_v17 = vpack.c.bf16 %v815_v14, %v814_v13  ;;  %3589 = vmatprep.mubr.msk.f32.mxu1 %vm738_vm2, %v4232_v18  ;;  %v4246_v21 = vld [vmem:[%s4896_s24] sm:$0xff]  ;;  %v4269_v29 = vld [vmem:[%s4895_s29 + $0x8] sm:$0xff]  ;;  %v4278_v31 = vld [vmem:[%s4895_s29 + $0x10] sm:$0xff]  ;;  %s4054_s24 = smov 96  }
  0x2a   : > { %3823 = vmatprep.subr.bf16.mxu1 %v3822_v12  ;;  %3819 = vmatprep.subr.bf16.mxu0 %v4048_v6  ;;  %v1101_v24 = vrot.slane %v4246_v21, %v4236_v19  ;;  %v4256_v25 = vld [vmem:[#allocation2] sm:$0xff]  ;;  %v1094_v26 = vrot.slane %v4246_v21, %v4249_v22  ;;  %v1108_v27 = vrot.slane %v4246_v21, %v4239_v20  ;;  %v4295_v34 = vld [vmem:[%s4895_s29 + $0x18] sm:$0xff]  ;;  %v4311_v37 = vld [vmem:[%s4895_s29 + $0x28] sm:$0xff] }
  0x2b   : > { %3825 = vmatpush3.bf16.msra.mxu1 %v3822_v12  ;;  %v1122_v30 = vrot.slane %v4246_v21, %v4252_v23  ;;  %v1115_v32 = vrot.slane %v4246_v21, %v4263_v28  ;;  %v4300_v35 = vld [vmem:[%s4895_s29 + $0x20] sm:$0xff]  ;;  %v1129_v36 = vrot.slane %v4246_v21, %v4288_v33  ;;  %v4316_v38 = vld [vmem:[%s4895_s29 + $0x30] sm:$0xff]  ;;  %v4325_v39 = vld [vmem:[%s4895_s29 + $0x38] sm:$0xff] }
  0x2c   : > { %3827 = vmatprep.subr.bf16.mxu1 %v3826_v17  ;;  %1103 = vbcast.lane.b32.xlu1 %v1101_v24, 256  ;;  %v3353_v43 = vld [vmem:[%s4897_s4] ss:$0 sm:$0xff] }
  0x2d   : > { %3821 = vmatpush3.bf16.msra.mxu0 %v3820_v16  ;;  %1096 = vbcast.lane.b32.xlu0 %v1094_v26, 256  ;;  %v3363_v41 = vld [vmem:[%s4898_s8] ss:$0 sm:$0xff] }
  0x2e   : > { %3830 = vmatprep.subr.bf16.mxu0 %v4048_v6 }
  0x2f   : > { %3829 = vmatpush3.bf16.msra.mxu1 %v3826_v17 }
  0x30   : > { %3579 = vmatmul.mubr.msk.f32.vlgmr.msra.gmra.mrb[0].mxu0 %vm738_vm2, %v4256_v25  ;;  %3845 = vmatprep.subr.bf16.mxu1 %v4048_v6 }
  0x31   : > { %3609 = vmatprep.mubr.msk.f32.mxu0 %vm4049_vm1, %v4050_v11  ;;  %1110 = vbcast.lane.b32.xlu1 %v1108_v27, 256 }
  0x32   : > { %3590 = vmatmul.mubr.msk.f32.vlgmr.msra.gmra.mrb[0].mxu1 %vm738_vm2, %v4269_v29  ;;  %1124 = vbcast.lane.b32.xlu0 %v1122_v30, 256 }
  0x33   : > { %3592 = vmatprep.mubr.msk.f32.mxu1 %vm738_vm2, %v4278_v31 }
  0x35   : > { %1117 = vbcast.lane.b32.xlu1 %v1115_v32, 256 }
  0x36   : > { %3593 = vmatmul.mubr.msk.f32.gmra.mrb[2].mxu1 %vm738_vm2, %v4295_v34 }
  0x37   : > { %3595 = vmatprep.mubr.msk.f32.mxu1 %vm738_vm2, %v4300_v35 }
  0x39   : > { %1131 = vbcast.lane.b32.xlu1 %v1129_v36, 256 }
  0x3a   : > { %3596 = vmatmul.mubr.msk.f32.gmra.mrb[4].mxu1 %vm738_vm2, %v4311_v37 }
  0x3b   : > { %3598 = vmatprep.mubr.msk.f32.mxu1 %vm738_vm2, %v4316_v38 }
  0x3e   : > { %3599 = vmatmul.mubr.msk.f32.gmra.mrb[6].mxu1 %vm738_vm2, %v4325_v39 }
  0x3f   : > { %3638 = vmatprep.mubr.msk.f32.mxu1 %vm4049_vm1, %v4050_v11 }
 0x103   : > { %v808_v45 = vpop.f32.mrb[0].mxu0 }
 0x104   : > { %v809_v46 = vadd.f32 %v3353_v43, %v808_v45  ;;  %v3580_v47 = vpop.f32.mrb[1].mxu0 }
 0x105   : > { %v3591_v48 = vpop.f32.mrb[0].mxu1 }
 0x106   : > { %v946_v49 = vcombine.high %v809_v46, %v809_v46  ;;  %v953_v50 = vrot.slane %v809_v46, %v952_v44  ;;  %v906_v51 = vpop.f32.mrb[1].mxu1 }
 0x108   : > { %v960_v52 = vrot.slane %v946_v49, %v952_v44  ;;  %v961_v53 = vcombine.high %v953_v50, %v953_v50  ;;  %v969_v54 = vrot.slane %v953_v50, %v952_v44 }
 0x109   : > { %v3594_v55 = vpop.f32.mrb[2].mxu1 }
 0x10a   : > { %v983_v56 = vrot.slane %v961_v53, %v952_v44  ;;  %v998_v57 = vrot.slane %v969_v54, %v4249_v22  ;;  %v916_v58 = vpop.f32.mrb[3].mxu1  ;;  %v991_v59 = vcombine.high %v969_v54, %v969_v54  ;;  %v962_v60 = vcombine.high %v960_v52, %v960_v52 }
 0x10b   : > { %v976_v61 = vrot.slane %v960_v52, %v952_v44 }
 0x10c   : > { %v1002_v62 = vrot.slane %v983_v56, %v4249_v22  ;;  %v1035_v63 = vadd.f32 %v998_v57, %v906_v51  ;;  %v993_v0 = vcombine.high %v983_v56, %v983_v56  ;;  %v1006_v1 = vrot.slane %v991_v59, %v4249_v22 }
 0x10d   : > { %v3597_v2 = vpop.f32.mrb[4].mxu1  ;;  %v990_v3 = vrot.slane %v962_v60, %v952_v44  ;;  %v1014_v4 = vrot.slane %v976_v61, %v4249_v22  ;;  %v992_v7 = vcombine.high %v976_v61, %v976_v61 }
 0x10e   : > { %v1036_v8 = vadd.f32 %v3591_v48, %v1002_v62  ;;  %3985 = vtanh.f32 %v1035_v63  ;;  %v1010_v9 = vrot.slane %v993_v0, %v4249_v22  ;;  %v1037_v10 = vadd.f32 %v1006_v1, %v916_v58  ;;  %v926_v12 = vpop.f32.mrb[5].mxu1 }
 0x10f   : > { %v1018_v13 = vrot.slane %v990_v3, %v4249_v22  ;;  %v1039_v14 = vadd.f32 %v1014_v4, %v926_v12  ;;  %v994_v16 = vcombine.high %v990_v3, %v990_v3  ;;  %v1022_v30 = vrot.slane %v992_v7, %v4249_v22  ;;  %v1097_v12 = vpop.permute.xlu0 %1096 }
 0x110   : > { %3987 = vtanh.f32 %v1036_v8  ;;  %v1038_v17 = vadd.f32 %v3594_v55, %v1010_v9  ;;  %v4355_v3 = vsub.s32 7, %v4227_v15  ;;  %v4358_v4 = vsub.s32 6, %v4227_v15  ;;  %v1104_v9 = vpop.permute.xlu1 %1103 }
 0x111   : > { %3989 = vtanh.f32 %v1037_v10  ;;  %v1040_v24 = vadd.f32 %v3597_v2, %v1018_v13  ;;  %v3600_v26 = vpop.f32.mrb[6].mxu1  ;;  %v1026_v27 = vrot.slane %v994_v16, %v4249_v22  ;;  %v4052_v2 = vmov 0  }
 0x112   : > { %3991 = vtanh.f32 %v1038_v17  ;;  %v936_v32 = vpop.f32.mrb[7].mxu1  ;;  %3983 = vset.pattern.permute.xlu0 %v4052_v2  ;;  %3984 = vset.pattern.permute.xlu1 %v4052_v2  ;;  %v1143_v7 = vrot.slane %v4246_v21, %v4355_v3  ;;  %v1136_v8 = vrot.slane %v4246_v21, %v4358_v4 }
 0x113   : > { %v1042_v36 = vadd.f32 %v3600_v26, %v1026_v27  ;;  %v1041_v40 = vadd.f32 %v1022_v30, %v936_v32  ;;  %3993 = vtanh.f32 %v1039_v14  ;;  %v1125_v14 = vpop.permute.xlu0 %1124 }
 0x114   : > { %3995 = vtanh.f32 %v1040_v24  ;;  %v1111_v10 = vpop.permute.xlu1 %1110 }
 0x115   : > { %3997 = vtanh.f32 %v1041_v40 }
 0x116   : > { %3999 = vtanh.f32 %v1042_v36 }
 0x118   : > { %v3986_v42 = vpop.eup %3985  ;;  %v1118_v13 = vpop.permute.xlu1 %1117 }
 0x119   : > { %v1058_v43 = vmul.f32 %v3986_v42, %v3363_v41 }
 0x11a   : > { %v3988_v44 = vpop.eup %3987 }
 0x11b   : > { %v3990_v45 = vpop.eup %3989  ;;  %v1066_v46 = vsel %vm738_vm2, %v1058_v43, 0.0  ;;  %v1059_v47 = vmul.f32 %v3988_v44, %v3363_v41 }
 0x11c   : > { %v3992_v48 = vpop.eup %3991  ;;  %1067 = vadd.xlane.f32.xlu0 %v1066_v46  ;;  %v1060_v49 = vmul.f32 %v3990_v45, %v3363_v41  ;;  %v1132_v16 = vpop.permute.xlu1 %1131 }
 0x11d   : > { %v3994_v50 = vpop.eup %3993  ;;  %v1061_v52 = vmul.f32 %v3992_v48, %v3363_v41  ;;  %v1069_v54 = vsel %vm738_vm2, %v1059_v47, 0.0 }
 0x11e   : > { %v1072_v51 = vsel %vm738_vm2, %v1060_v49, 0.0  ;;  %v3996_v53 = vpop.eup %3995  ;;  %v1062_v55 = vmul.f32 %v3994_v50, %v3363_v41  ;;  %v1196_v50 = vand.u32 127, %v950_v5 }
 0x11f   : > { %1073 = vadd.xlane.f32.xlu1 %v1072_v51  ;;  %v3998_v56 = vpop.eup %3997  ;;  %v1075_v57 = vsel %vm738_vm2, %v1061_v52, 0.0  ;;  %v1063_v58 = vmul.f32 %v3996_v53, %v3363_v41 }
 0x120   : > { %1070 = vadd.xlane.f32.xlu0 %v1069_v54  ;;  %v4000_v59 = vpop.eup %3999  ;;  %v1078_v60 = vsel %vm738_vm2, %v1062_v55, 0.0  ;;  %v1064_v61 = vmul.f32 %v3998_v56, %v3363_v41  ;;  %v4381_v52 = vsub.s32 %v1196_v50, %v4227_v15 }
 0x121   : > { %v1081_v62 = vsel %vm738_vm2, %v1063_v58, 0.0  ;;  %v1065_v63 = vmul.f32 %v4000_v59, %v3363_v41 }
 0x122   : > { %v1084_v0 = vsel %vm738_vm2, %v1064_v61, 0.0 }
 0x123   : > { %1076 = vadd.xlane.f32.xlu1 %v1075_v57  ;;  %v1087_v1 = vsel %vm738_vm2, %v1065_v63, 0.0 }
 0x124   : > { %1079 = vadd.xlane.f32.xlu0 %v1078_v60 }
 0x127   : > { %1082 = vadd.xlane.f32.xlu1 %v1081_v62 }
 0x128   : > { %1085 = vadd.xlane.f32.xlu0 %v1084_v0 }
 0x12b   : > { %1088 = vadd.xlane.f32.xlu1 %v1087_v1 }
 0x13c   : > { %1145 = vbcast.lane.b32.xlu1 %v1143_v7, 256 }
 0x13e   : > { %1138 = vbcast.lane.b32.xlu0 %v1136_v8, 256 }
 0x1a9   : > { %v1068_v17 = vpop.xlane.xlu0 %1067 }
 0x1aa   : > { %v4364_v24 = vadd.f32 %v1097_v12, %v1068_v17 }
 0x1ac   : > { %v1074_v26 = vpop.xlane.xlu1 %1073  ;;  %1172 = vperm.xlu0 %3983, %v4364_v24  }
 0x1ad   : > { %v1071_v27 = vpop.xlane.xlu0 %1070  ;;  %v1157_v40 = vadd.f32 %v1111_v10, %v1074_v26 }
 0x1ae   : > { %v1156_v30 = vadd.f32 %v1104_v9, %v1071_v27 }
 0x1b0   : > { %v1077_v32 = vpop.xlane.xlu1 %1076  ;;  %1175 = vperm.xlu1 %3984, %v1156_v30  }
 0x1b1   : > { %v4367_v36 = vadd.f32 %v1118_v13, %v1077_v32  ;;  %v1080_v21 = vpop.xlane.xlu0 %1079 }
 0x1b2   : > { %v1159_v44 = vadd.f32 %v1125_v14, %v1080_v21 }
 0x1b3   : > { %1181 = vperm.xlu0 %3983, %v4367_v36  }
 0x1b4   : > { %v1083_v41 = vpop.xlane.xlu1 %1082  ;;  %1178 = vperm.xlu1 %3984, %v1157_v40  }
 0x1b5   : > { %v4370_v42 = vadd.f32 %v1132_v16, %v1083_v41  ;;  %v1086_v43 = vpop.xlane.xlu0 %1085 }
 0x1b7   : > { %1187 = vperm.xlu0 %3983, %v4370_v42  }
 0x1b8   : > { %v1089_v45 = vpop.xlane.xlu1 %1088  ;;  %1184 = vperm.xlu1 %3984, %v1159_v44  }
 0x1b9   : > { %v1139_v46 = vpop.permute.xlu0 %1138 }
 0x1ba   : > { %v4373_v47 = vadd.f32 %v1139_v46, %v1086_v43 }
 0x1bc   : > { %v1146_v48 = vpop.permute.xlu1 %1145  ;;  %1190 = vperm.xlu1 %3984, %v4373_v47  }
 0x1bd   : > { %v4376_v49 = vadd.f32 %v1146_v48, %v1089_v45 }
 0x1bf   : > { %1193 = vperm.xlu0 %3983, %v4376_v49  }
 0x22b   : > { %v1173_v51 = vpop.permute.xlu0 %1172 }
 0x22c   : > { %v1200_v56 = vrot.slane %v1173_v51, %v4381_v52 }
 0x22f   : > { %v1176_v53 = vpop.permute.xlu1 %1175 }
 0x230   : > { %v1204_v54 = vrot.slane %v1176_v53, %v4381_v52 }
 0x232   : > { %v1182_v55 = vpop.permute.xlu0 %1181  ;;  %v1230_v59 = vsel %vm1229_vm3, %v1204_v54, %v1200_v56 }
 0x233   : > { %v1179_v57 = vpop.permute.xlu1 %1178  ;;  %v1212_v5 = vrot.slane %v1182_v55, %v4381_v52 }
 0x234   : > { %v1208_v58 = vrot.slane %v1179_v57, %v4381_v52 }
 0x236   : > { %v1232_v60 = vsel %vm1231_vm4, %v1208_v58, %v1230_v59  ;;  %v1188_v61 = vpop.permute.xlu0 %1187 }
 0x237   : > { %v1185_v15 = vpop.permute.xlu1 %1184  ;;  %v1234_v63 = vsel %vm1233_vm5, %v1212_v5, %v1232_v60  ;;  %v1220_v1 = vrot.slane %v1188_v61, %v4381_v52 }
 0x238   : > { %v1216_v62 = vrot.slane %v1185_v15, %v4381_v52 }
 0x23a   : > { %v1236_v0 = vsel %vm1235_vm6, %v1216_v62, %v1234_v63 }
 0x23b   : > { %v1191_v2 = vpop.permute.xlu1 %1190  ;;  %v1238_v8 = vsel %vm1237_vm7, %v1220_v1, %v1236_v0 }
 0x23c   : > { %v1224_v7 = vrot.slane %v1191_v2, %v4381_v52 }
 0x23e   : > { %v1194_v9 = vpop.permute.xlu0 %1193  ;;  %v1240_v10 = vsel %vm1239_vm8, %v1224_v7, %v1238_v8 }
 0x23f   : > { %v1228_v12 = vrot.slane %v1194_v9, %v4381_v52 }
 0x241   : > { %v1242_v13 = vsel %vm1241_vm9, %v1228_v12, %v1240_v10 }
 0x242   : > { %v1245_v14 = vsel %vm1244_vm10, %v1242_v13, -inf }
 0x243   : > { %1246 = vmax.xlane.f32.xlu1 %v1245_v14 }
 0x2d0   : > { %v1247_v16 = vpop.xlane.xlu1 %1246 }
 0x2d1   : > { %v1252_v17 = vrot.slane %v1247_v16, %v4249_v22  ;;  %v1256_v26 = vrot.slane %v1247_v16, %v4236_v19  ;;  %v1260_v27 = vrot.slane %v1247_v16, %v4239_v20  ;;  %v1264_v43 = vrot.slane %v1247_v16, %v4263_v28 }
 0x2d2   : > { %v1268_v48 = vrot.slane %v1247_v16, %v4252_v23  ;;  %v1272_v53 = vrot.slane %v1247_v16, %v4288_v33  ;;  %v1280_v58 = vrot.slane %v1247_v16, %v4355_v3 }
 0x2d3   : > { %v1289_v32 = vsub.f32 %v4364_v24, %v1252_v17  ;;  %v1290_v21 = vsub.f32 %v1156_v30, %v1256_v26  ;;  %v1291_v45 = vsub.f32 %v1157_v40, %v1260_v27  ;;  %v1292_v50 = vsub.f32 %v4367_v36, %v1264_v43 }
 0x2d4   : > { %v1293_v54 = vsub.f32 %v1159_v44, %v1268_v48  ;;  %v1276_v24 = vrot.slane %v1247_v16, %v4358_v4  ;;  %v1294_v30 = vsub.f32 %v4370_v42, %v1272_v53  ;;  %v1296_v44 = vsub.f32 %v4376_v49, %v1280_v58 }
 0x2d5   : > { %v1297_v41 = vmul.f32 1.442695, %v1289_v32  ;;  %v1299_v46 = vmul.f32 1.442695, %v1290_v21  ;;  %v1301_v51 = vmul.f32 1.442695, %v1291_v45 }
 0x2d6   : > { %v1303_v55 = vmul.f32 1.442695, %v1292_v50  ;;  %v1305_v40 = vmul.f32 1.442695, %v1293_v54  ;;  %v1295_v36 = vsub.f32 %v4373_v47, %v1276_v24  ;;  %v1307_v59 = vmul.f32 1.442695, %v1294_v30 }
 0x2d7   : > { %4001 = vpow2.f32 %v1297_v41  ;;  %v1311_v42 = vmul.f32 1.442695, %v1296_v44 }
 0x2d8   : > { %4003 = vpow2.f32 %v1299_v46  ;;  %v1309_v5 = vmul.f32 1.442695, %v1295_v36 }
 0x2d9   : > { %4005 = vpow2.f32 %v1301_v51 }
 0x2da   : > { %4007 = vpow2.f32 %v1303_v55 }
 0x2db   : > { %4009 = vpow2.f32 %v1305_v40 }
 0x2dc   : > { %4011 = vpow2.f32 %v1307_v59 }
 0x2dd   : > { %4013 = vpow2.f32 %v1309_v5 }
 0x2de   : > { %4015 = vpow2.f32 %v1311_v42 }
 0x2e1   : > { %v4002_v56 = vpop.eup %4001 }
 0x2e2   : > { %1322 = vperm.xlu0 %3983, %v4002_v56   ;;  %v4004_v57 = vpop.eup %4003 }
 0x2e3   : > { %v4006_v60 = vpop.eup %4005 }
 0x2e4   : > { %v4008_v15 = vpop.eup %4007 }
 0x2e5   : > { %v4010_v61 = vpop.eup %4009 }
 0x2e6   : > { %1325 = vperm.xlu0 %3983, %v4004_v57   ;;  %v4012_v62 = vpop.eup %4011 }
 0x2e7   : > { %v4014_v63 = vpop.eup %4013 }
 0x2e8   : > { %v4016_v47 = vpop.eup %4015 }
 0x2ea   : > { %1328 = vperm.xlu0 %3983, %v4006_v60  }
 0x2ee   : > { %1331 = vperm.xlu0 %3983, %v4008_v15  }
 0x2f2   : > { %1334 = vperm.xlu0 %3983, %v4010_v61  }
 0x2f6   : > { %1337 = vperm.xlu0 %3983, %v4012_v62  }
 0x2fa   : > { %1340 = vperm.xlu0 %3983, %v4014_v63  }
 0x2fe   : > { %1343 = vperm.xlu0 %3983, %v4016_v47  }
 0x361   : > { %v1323_v0 = vpop.permute.xlu0 %1322 }
 0x362   : > { %v1348_v12 = vrot.slane %v1323_v0, %v4381_v52 }
 0x365   : > { %v1326_v1 = vpop.permute.xlu0 %1325 }
 0x366   : > { %v1352_v9 = vrot.slane %v1326_v1, %v4381_v52 }
 0x368   : > { %v1377_v17 = vsel %vm1229_vm3, %v1352_v9, %v1348_v12 }
 0x369   : > { %v1329_v2 = vpop.permute.xlu0 %1328 }
 0x36a   : > { %v1356_v10 = vrot.slane %v1329_v2, %v4381_v52 }
 0x36c   : > { %v1378_v27 = vsel %vm1231_vm4, %v1356_v10, %v1377_v17 }
 0x36d   : > { %v1332_v7 = vpop.permute.xlu0 %1331 }
 0x36e   : > { %v1360_v13 = vrot.slane %v1332_v7, %v4381_v52 }
 0x370   : > { %v1379_v21 = vsel %vm1233_vm5, %v1360_v13, %v1378_v27 }
 0x371   : > { %v1335_v49 = vpop.permute.xlu0 %1334 }
 0x372   : > { %v1364_v14 = vrot.slane %v1335_v49, %v4381_v52 }
 0x374   : > { %v1380_v41 = vsel %vm1235_vm6, %v1364_v14, %v1379_v21 }
 0x375   : > { %v1338_v8 = vpop.permute.xlu0 %1337 }
 0x376   : > { %v1368_v26 = vrot.slane %v1338_v8, %v4381_v52 }
 0x378   : > { %v1381_v45 = vsel %vm1237_vm7, %v1368_v26, %v1380_v41 }
 0x379   : > { %v1341_v16 = vpop.permute.xlu0 %1340 }
 0x37a   : > { %v1372_v32 = vrot.slane %v1341_v16, %v4381_v52 }
 0x37c   : > { %v1382_v48 = vsel %vm1239_vm8, %v1372_v32, %v1381_v45 }
 0x37d   : > { %v1344_v43 = vpop.permute.xlu0 %1343 }
 0x37e   : > { %v1376_v46 = vrot.slane %v1344_v43, %v4381_v52 }
 0x380   : > { %v1383_v50 = vsel %vm1241_vm9, %v1376_v46, %v1382_v48 }
 0x381   : > { %v1385_v51 = vsel %vm1244_vm10, %v1383_v50, 0.0 }
 0x382   : > { %1386 = vadd.xlane.f32.xlu0 %v1385_v51 }
 0x40f   : > { %v1387_v53 = vpop.xlane.xlu0 %1386 }
 0x410   : > { %4017 = vrcp.f32 %v1387_v53 }
 0x41a   : > { %v4018_v54 = vpop.eup %4017 }
 0x41b   : > { %v1409_v55 = vrot.slane %v4018_v54, %v4252_v23  ;;  %v1393_v24 = vrot.slane %v4018_v54, %v4249_v22  ;;  %v1397_v58 = vrot.slane %v4018_v54, %v4236_v19  ;;  %v1401_v36 = vrot.slane %v4018_v54, %v4239_v20  ;;  %v1544_v20 = vld [vmem:[%s4862_s10] sm:$0xff] }
 0x41c   : > { %v1405_v44 = vrot.slane %v4018_v54, %v4263_v28  ;;  %v1413_v42 = vrot.slane %v4018_v54, %v4288_v33  ;;  %v1417_v22 = vrot.slane %v4018_v54, %v4358_v4  ;;  %v1421_v19 = vrot.slane %v4018_v54, %v4355_v3  ;;  %v1545_v28 = vld [vmem:[%s4862_s10 + $0x8] sm:$0xff]  ;;  %v3372_v33 = vld [vmem:[%s4862_s10 + $0x20] sm:$0xff] }
 0x41d   : > { %v1434_v30 = vmul.f32 %v4010_v61, %v1409_v55  ;;  %v1430_v40 = vmul.f32 %v4002_v56, %v1393_v24  ;;  %v1431_v52 = vmul.f32 %v4004_v57, %v1397_v58  ;;  %v1432_v59 = vmul.f32 %v4006_v60, %v1401_v36  ;;  %v3373_v3 = vld [vmem:[%s4862_s10 + $0x28] sm:$0xff]  ;;  %v1546_v60 = vld [vmem:[%s4862_s10 + $0x10] sm:$0xff] }
 0x41e   : > { %v1433_v5 = vmul.f32 %v4008_v15, %v1405_v44  ;;  %v1435_v23 = vmul.f32 %v4012_v62, %v1413_v42  ;;  %v1436_v56 = vmul.f32 %v4014_v63, %v1417_v22  ;;  %v1437_v57 = vmul.f32 %v4016_v47, %v1421_v19  ;;  %v1547_v15 = vld [vmem:[%s4862_s10 + $0x18] sm:$0xff]  ;;  %v3374_v62 = vld [vmem:[%s4862_s10 + $0x30] sm:$0xff] }
 0x41f   : > { %1460 = vperm.xlu0 %3983, %v1434_v30   ;;  %1440 = vperm.xlu1 %3984, %v1430_v40   ;;  %v3831_v4 = vpack.c.bf16 %v1545_v28, %v1544_v20  ;;  %v3846_v61 = vpack.c.bf16 %v3373_v3, %v3372_v33  ;;  %v3375_v63 = vld [vmem:[%s4862_s10 + $0x38] sm:$0xff]  ;;  %v3834_v47 = vpack.c.bf16 %v1547_v15, %v1546_v60 }
 0x420   : > { %v3849_v0 = vpack.c.bf16 %v3375_v63, %v3374_v62 }
 0x421   : > { %3832 = vmatpush3.bf16.msra.mxu0 %v3831_v4  ;;  %3847 = vmatpush3.bf16.msra.mxu1 %v3846_v61 }
 0x422   : > { %3833 = vmatprep.subr.bf16.mxu0 %v4048_v6  ;;  %3848 = vmatprep.subr.bf16.mxu1 %v4048_v6 }
 0x423   : > { %1445 = vperm.xlu1 %3984, %v1431_v52  }
 0x425   : > { %3835 = vmatpush3.bf16.msra.mxu0 %v3834_v47  ;;  %3850 = vmatpush3.bf16.msra.mxu1 %v3849_v0 }
 0x426   : > { %3836 = vmatprep.subr.bf16.mxu0 %v4048_v6  ;;  %3851 = vmatprep.subr.bf16.mxu1 %v4048_v6 }
 0x427   : > { %1450 = vperm.xlu1 %3984, %v1432_v59  }
 0x42b   : > { %1455 = vperm.xlu1 %3984, %v1433_v5  }
 0x42f   : > { %1465 = vperm.xlu1 %3984, %v1435_v23  }
 0x433   : > { %1470 = vperm.xlu1 %3984, %v1436_v56  }
 0x437   : > { %1475 = vperm.xlu1 %3984, %v1437_v57  }
 0x49e   : > { %v1441_v1 = vpop.permute.xlu1 %1440  ;;  %v1461_v49 = vpop.permute.xlu0 %1460 }
 0x49f   : > { %v1478_v2 = vmul.f32 %v1441_v1, %v4232_v18  ;;  %v1482_v12 = vmul.f32 %v1461_v49, %v4300_v35 }
 0x4a1   : > { %v1486_v9 = vsel %vm738_vm2, %v1478_v2, 0.0  ;;  %v1514_v27 = vsel %vm738_vm2, %v1482_v12, 0.0 }
 0x4a2   : > { %v1446_v7 = vpop.permute.xlu1 %1445  ;;  %v1487_v16 = vrot.slane %v1486_v9, 4  ;;  %v1515_v45 = vrot.slane %v1514_v27, 4 }
 0x4a3   : > { %v1479_v8 = vmul.f32 %v1446_v7, %v4269_v29 }
 0x4a4   : > { %v1488_v41 = vadd.f32 %v1487_v16, %v1486_v9  ;;  %v1516_v55 = vadd.f32 %v1515_v45, %v1514_v27  ;;  %v1542_v16 = vld [vmem:[%s4861_s9] sm:$0xff]  ;;  %v1543_v27 = vld [vmem:[%s4861_s9 + $0x8] sm:$0xff] }
 0x4a5   : > { %v1493_v10 = vsel %vm738_vm2, %v1479_v8, 0.0  ;;  %v3837_v45 = vpack.c.bf16 %v1543_v27, %v1542_v16  ;;  %v3413_v16 = vld [vmem:[%s4866_s14 + $0x30] sm:$0xff] }
 0x4a6   : > { %v1494_v13 = vrot.slane %v1493_v10, 4  ;;  %v1451_v14 = vpop.permute.xlu1 %1450  ;;  %v1489_v51 = vrot.slane %v1488_v41, 2  ;;  %v1517_v42 = vrot.slane %v1516_v55, 2 }
 0x4a7   : > { %v1480_v17 = vmul.f32 %v1451_v14, %v4278_v31 }
 0x4a8   : > { %v1495_v18 = vadd.f32 %v1494_v13, %v1493_v10  ;;  %v1518_v60 = vadd.f32 %v1517_v42, %v1516_v55  ;;  %v3399_v42 = vld [vmem:[%s4863_s11 + $0x48] sm:$0xff] }
 0x4a9   : > { %v1500_v26 = vsel %vm738_vm2, %v1480_v17, 0.0 }
 0x4aa   : > { %v1501_v32 = vrot.slane %v1500_v26, 4  ;;  %v1456_v21 = vpop.permute.xlu1 %1455  ;;  %v1496_v35 = vrot.slane %v1495_v18, 2  ;;  %v1519_v49 = vrot.slane %v1518_v60, 1 }
 0x4ab   : > { %v1481_v29 = vmul.f32 %v1456_v21, %v4295_v34  ;;  %v1490_v34 = vadd.f32 %v1489_v51, %v1488_v41  ;;  %v1718_v51 = vld [vmem:[%s4863_s11 + $0x8] sm:$0xff] }
 0x4ac   : > { %v1502_v43 = vadd.f32 %v1501_v32, %v1500_v26  ;;  %v1497_v30 = vadd.f32 %v1496_v35, %v1495_v18  ;;  %v1520_v17 = vadd.f32 %v1519_v49, %v1518_v60  ;;  %v3370_v18 = vld [vmem:[%s4861_s9 + $0x10] sm:$0xff]  ;;  %v3371_v32 = vld [vmem:[%s4861_s9 + $0x18] sm:$0xff]  ;;  %v3416_v60 = vld [vmem:[%s4867_s15 + $0x28] sm:$0xff] }
 0x4ad   : > { %v1507_v46 = vsel %vm738_vm2, %v1481_v29, 0.0  ;;  %v1491_v57 = vrot.slane %v1490_v34, 1  ;;  %v2299_v49 = vld [vmem:[%s4866_s14] sm:$0xff] }
 0x4ae   : > { %v1508_v48 = vrot.slane %v1507_v46, 4  ;;  %v1466_v50 = vpop.permute.xlu1 %1465  ;;  %v1503_v53 = vrot.slane %v1502_v43, 2  ;;  %v1498_v22 = vrot.slane %v1497_v30, 1 }
 0x4af   : > { %v1483_v31 = vmul.f32 %v1466_v50, %v4311_v37  ;;  %v1492_v63 = vadd.f32 %v1491_v57, %v1490_v34  ;;  %v1717_v50 = vld [vmem:[%s4863_s11] sm:$0xff]  ;;  %v3401_v57 = vld [vmem:[%s4863_s11 + $0x58] sm:$0xff] }
 0x4b0   : > { %v1509_v54 = vadd.f32 %v1508_v48, %v1507_v46  ;;  %v1504_v36 = vadd.f32 %v1503_v53, %v1502_v43  ;;  %v3852_v46 = vpack.c.bf16 %v3371_v32, %v3370_v18  ;;  %v3380_v53 = vld [vmem:[%s4863_s11 + $0x20] sm:$0xff]  ;;  %v3840_v55 = vpack.c.bf16 %v1718_v51, %v1717_v50 }
 0x4b1   : > { %v1521_v24 = vsel %vm738_vm2, %v1483_v31, 0.0  ;;  %v3381_v31 = vld [vmem:[%s4863_s11 + $0x28] sm:$0xff]  ;;  %v3366_v18 = vld [vmem:[%s4864_s12] ss:$0 sm:$0xff] }
 0x4b2   : > { %v1510_v40 = vrot.slane %v1509_v54, 2  ;;  %v1522_v58 = vrot.slane %v1521_v24, 4  ;;  %v1471_v52 = vpop.permute.xlu1 %1470  ;;  %v1505_v20 = vrot.slane %v1504_v36, 1  ;;  %v3367_v32 = vld [vmem:[%s4865_s13] ss:$0 sm:$0xff] }
 0x4b3   : > { %v1484_v59 = vmul.f32 %v1471_v52, %v4316_v38  ;;  %v1499_v38 = vadd.f32 %v1498_v22, %v1497_v30  ;;  %v1719_v30 = vld [vmem:[%s4863_s11 + $0x10] sm:$0xff]  ;;  %v3383_v52 = vld [vmem:[%s4863_s11 + $0x38] sm:$0xff] }
 0x4b4   : > { %v1511_v44 = vadd.f32 %v1510_v40, %v1509_v54  ;;  %v1523_v5 = vadd.f32 %v1522_v58, %v1521_v24  ;;  %v1506_v47 = vadd.f32 %v1505_v20, %v1504_v36  ;;  %v4524_v54 = vld [vmem:[%s4186_s2] sm:$0xff]  ;;  %v3855_v24 = vpack.c.bf16 %v3381_v31, %v3380_v53  ;;  %v1720_v40 = vld [vmem:[%s4863_s11 + $0x18] sm:$0xff]  ;;  %v3382_v58 = vld [vmem:[%s4863_s11 + $0x30] sm:$0xff] }
 0x4b5   : > { %v1528_v23 = vsel %vm738_vm2, %v1484_v59, 0.0  ;;  %v1556_v8 = vsel %vm1229_vm3, %v1499_v38, %v1492_v63  ;;  %v3843_v34 = vpack.c.bf16 %v1720_v40, %v1719_v30  ;;  %v3858_v36 = vpack.c.bf16 %v3383_v52, %v3382_v58  ;;  %v3390_v59 = vld [vmem:[%s4862_s10 + $0x40] sm:$0xff]  ;;  %v3417_v63 = vld [vmem:[%s4867_s15 + $0x30] sm:$0xff] }
 0x4b6   : > { %v1524_v56 = vrot.slane %v1523_v5, 2  ;;  %v1529_v37 = vrot.slane %v1528_v23, 4  ;;  %v1476_v19 = vpop.permute.xlu1 %1475  ;;  %v1512_v33 = vrot.slane %v1511_v44, 1  ;;  %v1557_v10 = vsel %vm1231_vm4, %v1506_v47, %v1556_v8  ;;  %v3418_v47 = vld [vmem:[%s4867_s15 + $0x38] sm:$0xff]  ;;  %v2300_v8 = vld [vmem:[%s4866_s14 + $0x8] sm:$0xff] }
 0x4b7   : > { %v1485_v28 = vmul.f32 %v1476_v19, %v4325_v39  ;;  %v3400_v19 = vld [vmem:[%s4863_s11 + $0x50] sm:$0xff] }
 0x4b8   : > { %v1525_v4 = vadd.f32 %v1524_v56, %v1523_v5  ;;  %v1530_v3 = vadd.f32 %v1529_v37, %v1528_v23  ;;  %v1513_v0 = vadd.f32 %v1512_v33, %v1511_v44  ;;  %v3391_v44 = vld [vmem:[%s4862_s10 + $0x48] sm:$0xff]  ;;  %v3398_v5 = vld [vmem:[%s4863_s11 + $0x40] sm:$0xff]  ;;  %v3392_v56 = vld [vmem:[%s4862_s10 + $0x50] sm:$0xff] }
 0x4b9   : > { %v1535_v15 = vsel %vm738_vm2, %v1485_v28, 0.0  ;;  %v3861_v23 = vpack.c.bf16 %v3391_v44, %v3390_v59  ;;  %v3870_v22 = vpack.c.bf16 %v3399_v42, %v3398_v5  ;;  %v3393_v37 = vld [vmem:[%s4862_s10 + $0x58] sm:$0xff]  ;;  %v3873_v28 = vpack.c.bf16 %v3401_v57, %v3400_v19  ;;  %v3388_v33 = vld [vmem:[%s4861_s9 + $0x20] sm:$0xff] }
 0x4ba   : > { %v1531_v61 = vrot.slane %v1530_v3, 2  ;;  %v1536_v62 = vrot.slane %v1535_v15, 4  ;;  %v1526_v1 = vrot.slane %v1525_v4, 1  ;;  %v1558_v12 = vsel %vm1233_vm5, %v1513_v0, %v1557_v10  ;;  %v3412_v10 = vld [vmem:[%s4866_s14 + $0x28] sm:$0xff]  ;;  %v3403_v42 = vld [vmem:[%s4865_s13 + $0x2] ss:$0 sm:$0xff] }
 0x4bb   : > { %v1559_v41 = vsel %vm1235_vm6, %v1520_v17, %v1558_v12  ;;  %v3864_v20 = vpack.c.bf16 %v3393_v37, %v3392_v56  ;;  %v2301_v12 = vld [vmem:[%s4866_s14 + $0x10] sm:$0xff]  ;;  %v3414_v17 = vld [vmem:[%s4866_s14 + $0x38] sm:$0xff]  ;;  %v3397_v56 = vld [vmem:[%s4864_s12 + $0x2] ss:$0 sm:$0xff] }
 0x4bc   : > { %v1532_v2 = vadd.f32 %v1531_v61, %v1530_v3  ;;  %v1537_v7 = vadd.f32 %v1536_v62, %v1535_v15  ;;  %v1527_v13 = vadd.f32 %v1526_v1, %v1525_v4  ;;  %v3389_v4 = vld [vmem:[%s4861_s9 + $0x28] sm:$0xff]  ;;  %v3415_v3 = vld [vmem:[%s4867_s15 + $0x20] sm:$0xff]  ;;  %v3897_v1 = vpack.c.bf16 %v3418_v47, %v3417_v63 }
 0x4bd   : > { %v3867_v15 = vpack.c.bf16 %v3389_v4, %v3388_v33  ;;  %v3894_v38 = vpack.c.bf16 %v3416_v60, %v3415_v3  ;;  %v2303_v61 = vld [vmem:[%s4867_s15] sm:$0xff]  ;;  %v2304_v62 = vld [vmem:[%s4867_s15 + $0x8] sm:$0xff]  ;;  %v3903_v27 = vpack.c.bf16 %v3414_v17, %v3413_v16 }
 0x4be   : > { %v1533_v9 = vrot.slane %v1532_v2, 1  ;;  %v1538_v39 = vrot.slane %v1537_v7, 2  ;;  %v1560_v29 = vsel %vm1237_vm7, %v1527_v13, %v1559_v41  ;;  %v3876_v0 = vpack.c.bf16 %v2304_v62, %v2303_v61  ;;  %v2302_v13 = vld [vmem:[%s4866_s14 + $0x18] sm:$0xff]  ;;  %v3379_v41 = vld [vmem:[%s4864_s12 + $0x1] ss:$0 sm:$0xff]  ;;  %v2459_v3 = vld [vmem:[%s4868_s16 + $0x8] sm:$0xff] }
 0x4bf   : > { %v2458_v4 = vld [vmem:[%s4868_s16] sm:$0xff] }
 0x4c0   : > { %v1539_v14 = vadd.f32 %v1538_v39, %v1537_v7  ;;  %v1534_v26 = vadd.f32 %v1533_v9, %v1532_v2  ;;  %v2305_v2 = vld [vmem:[%s4867_s15 + $0x10] sm:$0xff]  ;;  %v2306_v7 = vld [vmem:[%s4867_s15 + $0x18] sm:$0xff]  ;;  %v3411_v9 = vld [vmem:[%s4866_s14 + $0x20] sm:$0xff]  ;;  %v3882_v39 = vpack.c.bf16 %v2300_v8, %v2299_v49  ;;  %v3888_v47 = vpack.c.bf16 %v2459_v3, %v2458_v4 }
 0x4c1   : > { %v4039_v62 = vld [vmem:[#allocation2] sm:$0xff]  ;;  %v3426_v49 = vld [vmem:[%s4868_s16 + $0x38] sm:$0xff] }
 0x4c2   : > { %v1540_v21 = vrot.slane %v1539_v14, 1  ;;  %v1561_v35 = vsel %vm1239_vm8, %v1534_v26, %v1560_v29  ;;  %v3885_v26 = vpack.c.bf16 %v2302_v13, %v2301_v12  ;;  %v3385_v29 = vld [vmem:[%s4865_s13 + $0x1] ss:$0 sm:$0xff]  ;;  %v3432_v13 = vld [vmem:[%s4866_s14 + $0x48] sm:$0xff] }
 0x4c3   : > { %v3431_v12 = vld [vmem:[%s4866_s14 + $0x40] sm:$0xff] }
 0x4c4   : > { %v1541_v43 = vadd.f32 %v1540_v21, %v1539_v14  ;;  %v3900_v14 = vpack.c.bf16 %v3412_v10, %v3411_v9  ;;  %v3944_v21 = vadd.f32 %v3367_v32, %v3366_v18  ;;  %v3436_v10 = vld [vmem:[%s4867_s15 + $0x48] sm:$0xff]  ;;  %v3918_v17 = vpack.c.bf16 %v3432_v13, %v3431_v12  ;;  %v3433_v18 = vld [vmem:[%s4866_s14 + $0x50] sm:$0xff]  ;;  %v3434_v32 = vld [vmem:[%s4866_s14 + $0x58] sm:$0xff] }
 0x4c6   : > { %v4499_v48 = vsel %vm1241_vm9, %v1541_v43, %v1561_v35 }
 0x4c7   : > { %3610 = vmatmul.mubr.msk.f32.vlgmr.msra.gmra.mrb[2].mxu0 %vm738_vm2, %v4499_v48  ;;  %3639 = vmatmul.mubr.msk.f32.vlgmr.msra.gmra.mrb[8].mxu1 %vm738_vm2, %v4499_v48 }
 0x4c8   : > { %3838 = vmatpush3.bf16.msra.mxu0 %v3837_v45  ;;  %3853 = vmatpush3.bf16.msra.mxu1 %v3852_v46  ;;  %v3946_v46 = vadd.f32 %v3385_v29, %v3379_v41  ;;  %v3921_v41 = vpack.c.bf16 %v3434_v32, %v3433_v18  ;;  %v3443_v29 = vld [vmem:[%s4868_s16 + $0x40] sm:$0xff] }
 0x4c9   : > { %3616 = vmatprep.mubr.msk.f32.mxu0 %vm4049_vm1, %v4050_v11  ;;  %3839 = vmatprep.subr.bf16.mxu0 %v4048_v6 }
 0x4ca   : > { %3645 = vmatprep.mubr.msk.f32.mxu1 %vm4049_vm1, %v4050_v11  ;;  %3854 = vmatprep.subr.bf16.mxu1 %v4048_v6 }
 0x4cf   : > { %3617 = vmatmul.mubr.msk.f32.vlgmr.msra.gmra.mrb[2].mxu0 %vm1635_vm11, %v4524_v54  ;;  %3646 = vmatmul.mubr.msk.f32.vlgmr.msra.gmra.mrb[8].mxu1 %vm1635_vm11, %v4524_v54 }
 0x4d0   : > { %3841 = vmatpush3.bf16.msra.mxu0 %v3840_v55  ;;  %3856 = vmatpush3.bf16.msra.mxu1 %v3855_v24 }
 0x4d1   : > { %3842 = vmatprep.subr.bf16.mxu0 %v4048_v6  ;;  %3857 = vmatprep.subr.bf16.mxu1 %v4048_v6 }
 0x4d2   : > { %3627 = vmatprep.mubr.msk.f32.mxu0 %vm4049_vm1, %v4050_v11  ;;  %3656 = vmatprep.mubr.msk.f32.mxu1 %vm4049_vm1, %v4050_v11 }
 0x4d4   : > { %3844 = vmatpush3.bf16.msra.mxu0 %v3843_v34  ;;  %3859 = vmatpush3.bf16.msra.mxu1 %v3858_v36 }
 0x4d5   : > { %3860 = vmatprep.subr.bf16.mxu0 %v4048_v6  ;;  %3869 = vmatprep.subr.bf16.mxu1 %v4048_v6 }
 0x4d7   : > { %3628 = vmatmul.mubr.msk.f32.vlgmr.msra.gmra.mrb[2].mxu0 %vm738_vm2, %v4256_v25  ;;  %3657 = vmatmul.mubr.msk.f32.vlgmr.msra.gmra.mrb[8].mxu1 %vm738_vm2, %v4256_v25 }
 0x4d8   : > { %3862 = vmatpush3.bf16.msra.mxu0 %v3861_v23  ;;  %3871 = vmatpush3.bf16.msra.mxu1 %v3870_v22 }
 0x4d9   : > { %3863 = vmatprep.subr.bf16.mxu0 %v4048_v6  ;;  %3872 = vmatprep.subr.bf16.mxu1 %v4048_v6 }
 0x4da   : > { %3667 = vmatprep.mubr.msk.f32.mxu0 %vm4049_vm1, %v4050_v11  ;;  %3685 = vmatprep.mubr.msk.f32.mxu1 %vm4049_vm1, %v4050_v11 }
 0x4dc   : > { %3865 = vmatpush3.bf16.msra.mxu0 %v3864_v20  ;;  %3874 = vmatpush3.bf16.msra.mxu1 %v3873_v28 }
 0x4dd   : > { %3866 = vmatprep.subr.bf16.mxu0 %v4048_v6  ;;  %3893 = vmatprep.subr.bf16.mxu1 %v4048_v6 }
 0x4df   : > { %3668 = vmatmul.mubr.msk.f32.vlgmr.msra.gmra.mrb[4].mxu0 %vm738_vm2, %v4499_v48  ;;  %3686 = vmatmul.mubr.msk.f32.vlgmr.msra.gmra.mrb[10].mxu1 %vm738_vm2, %v4256_v25  ;;  %v3879_v25 = vpack.c.bf16 %v2306_v7, %v2305_v2  ;;  %v2460_v2 = vld [vmem:[%s4868_s16 + $0x10] sm:$0xff]  ;;  %v2461_v7 = vld [vmem:[%s4868_s16 + $0x18] sm:$0xff] }
 0x4e0   : > { %3868 = vmatpush3.bf16.msra.mxu0 %v3867_v15  ;;  %3895 = vmatpush3.bf16.msra.mxu1 %v3894_v38  ;;  %v3423_v15 = vld [vmem:[%s4868_s16 + $0x20] sm:$0xff]  ;;  %v3424_v38 = vld [vmem:[%s4868_s16 + $0x28] sm:$0xff]  ;;  %v3891_v8 = vpack.c.bf16 %v2461_v7, %v2460_v2 }
 0x4e1   : > { %3674 = vmatprep.mubr.msk.f32.mxu0 %vm4049_vm1, %v4050_v11  ;;  %3875 = vmatprep.subr.bf16.mxu0 %v4048_v6 }
 0x4e2   : > { %3896 = vmatprep.subr.bf16.mxu1 %v4048_v6  ;;  %3729 = vmatprep.mubr.msk.f32.mxu1 %vm4049_vm1, %v4050_v11 }
 0x4e3   : > { %3675 = vmatmul.mubr.msk.f32.vlgmr.msra.gmra.mrb[6].mxu0 %vm1635_vm11, %v4524_v54 }
 0x4e4   : > { %3877 = vmatpush3.bf16.msra.mxu0 %v3876_v0  ;;  %3898 = vmatpush3.bf16.msra.mxu1 %v3897_v1  ;;  %v3906_v1 = vpack.c.bf16 %v3424_v38, %v3423_v15 }
 0x4e5   : > { %3878 = vmatprep.subr.bf16.mxu0 %v4048_v6  ;;  %3696 = vmatprep.mubr.msk.f32.mxu0 %vm4049_vm1, %v4050_v11 }
 0x4e6   : > { %3899 = vmatprep.subr.bf16.mxu1 %v4048_v6 }
 0x4e7   : > { %3730 = vmatmul.mubr.msk.f32.vlgmr.msra.gmra.mrb[12].mxu1 %vm738_vm2, %v4499_v48 }
 0x4e8   : > { %3880 = vmatpush3.bf16.msra.mxu0 %v3879_v25  ;;  %3740 = vmatprep.mubr.msk.f32.mxu1 %vm4049_vm1, %v4050_v11  ;;  %v3425_v25 = vld [vmem:[%s4868_s16 + $0x30] sm:$0xff] }
 0x4e9   : > { %3881 = vmatprep.subr.bf16.mxu0 %v4048_v6  ;;  %3901 = vmatpush3.bf16.msra.mxu1 %v3900_v14  ;;  %v3909_v9 = vpack.c.bf16 %v3426_v49, %v3425_v25  ;;  %v4732_v14 = vld [vmem:[#allocation3] sm:$0xff]  ;;  %v3448_v25 = vld [vmem:[%s4870_s18 + $0x2] ss:$0 sm:$0xff] }
 0x4ea   : > { %3902 = vmatprep.subr.bf16.mxu1 %v4048_v6 }
 0x4eb   : > { %3697 = vmatmul.mubr.msk.f32.vlgmr.msra.gmra.mrb[8].mxu0 %vm738_vm2, %v4499_v48 }
 0x4ec   : > { %3707 = vmatprep.mubr.msk.f32.mxu0 %vm4049_vm1, %v4050_v11  ;;  %3883 = vmatpush3.bf16.msra.mxu0 %v3882_v39  ;;  %v3435_v39 = vld [vmem:[%s4867_s15 + $0x40] sm:$0xff] }
 0x4ed   : > { %3884 = vmatprep.subr.bf16.mxu0 %v4048_v6  ;;  %3904 = vmatpush3.bf16.msra.mxu1 %v3903_v27  ;;  %v3912_v16 = vpack.c.bf16 %v3436_v10, %v3435_v39  ;;  %v3438_v27 = vld [vmem:[%s4867_s15 + $0x58] sm:$0xff] }
 0x4ee   : > { %3905 = vmatprep.subr.bf16.mxu1 %v4048_v6 }
 0x4f0   : > { %3886 = vmatpush3.bf16.msra.mxu0 %v3885_v26  ;;  %v3437_v26 = vld [vmem:[%s4867_s15 + $0x50] sm:$0xff] }
 0x4f1   : > { %3887 = vmatprep.subr.bf16.mxu0 %v4048_v6 }
 0x5aa   : > { %v1794_v43 = vpop.f32.mrb[2].mxu0  ;;  %v2041_v45 = vpop.f32.mrb[8].mxu1 }
 0x5ab   : > { %v3945_v35 = vadd.f32 %v3944_v21, %v1794_v43  ;;  %v3629_v50 = vpop.f32.mrb[3].mxu0  ;;  %v3658_v51 = vpop.f32.mrb[9].mxu1  ;;  %v3947_v31 = vadd.f32 %v3946_v46, %v2041_v45  ;;  %v3915_v21 = vpack.c.bf16 %v3438_v27, %v3437_v26  ;;  %v3444_v43 = vld [vmem:[%s4868_s16 + $0x48] sm:$0xff]  ;;  %v3051_v45 = vld [vmem:[%s4872_s20] sm:$0xff] }
 0x5ac   : > { %v3052_v46 = vld [vmem:[%s4872_s20 + $0x8] sm:$0xff]  ;;  %v3445_v51 = vld [vmem:[%s4868_s16 + $0x50] sm:$0xff] }
 0x5ad   : > { %v3369_v53 = vmul.f32 -1.442695, %v3945_v35  ;;  %v3387_v55 = vmul.f32 -1.442695, %v3947_v31  ;;  %v3924_v35 = vpack.c.bf16 %v3444_v43, %v3443_v29  ;;  %v3930_v50 = vpack.c.bf16 %v3052_v46, %v3051_v45  ;;  %v3053_v31 = vld [vmem:[%s4872_s20 + $0x10] sm:$0xff] }
 0x5ae   : > { %v3453_v46 = vld [vmem:[%s4874_s22] ss:$0 sm:$0xff] }
 0x5af   : > { %4019 = vpow2.f32 %v3369_v53  ;;  %v3446_v53 = vld [vmem:[%s4868_s16 + $0x58] sm:$0xff] }
 0x5b0   : > { %4021 = vpow2.f32 %v3387_v55  ;;  %v3054_v55 = vld [vmem:[%s4872_s20 + $0x18] sm:$0xff] }
 0x5b2   : > { %v2126_v24 = vpop.f32.mrb[4].mxu0  ;;  %v2288_v30 = vpop.f32.mrb[10].mxu1 }
 0x5b3   : > { %v3669_v40 = vpop.f32.mrb[5].mxu0  ;;  %v3687_v58 = vpop.f32.mrb[11].mxu1  ;;  %v2289_v22 = vadd.f32 %v3403_v42, %v2288_v30  ;;  %v3933_v30 = vpack.c.bf16 %v3054_v55, %v3053_v31  ;;  %v3408_v42 = vld [vmem:[%s4870_s18] ss:$0 sm:$0xff] }
 0x5b4   : > { %v3047_v40 = vld [vmem:[%s4871_s19] sm:$0xff]  ;;  %v3048_v58 = vld [vmem:[%s4871_s19 + $0x8] sm:$0xff] }
 0x5b6   : > { %v2196_v52 = vpop.f32.mrb[6].mxu0 }
 0x5b7   : > { %v2197_v34 = vadd.f32 %v2196_v52, %v2126_v24  ;;  %v3676_v36 = vpop.f32.mrb[7].mxu0  ;;  %v3927_v24 = vpack.c.bf16 %v3446_v53, %v3445_v51  ;;  %v3049_v52 = vld [vmem:[%s4871_s19 + $0x10] sm:$0xff] }
 0x5b8   : > { %v3199_v36 = vld [vmem:[%s4873_s21 + $0x8] sm:$0xff] }
 0x5b9   : > { %v4020_v59 = vpop.eup %4019  ;;  %v2208_v19 = vadd.f32 %v3397_v56, %v2197_v34  ;;  %v3936_v34 = vpack.c.bf16 %v3048_v58, %v3047_v40 }
 0x5ba   : > { %v1802_v44 = vadd.f32 1.0, %v4020_v59  ;;  %v4022_v5 = vpop.eup %4021 }
 0x5bb   : > { %v2049_v23 = vadd.f32 1.0, %v4022_v5  ;;  %v3407_v5 = vld [vmem:[%s4869_s17] ss:$0 sm:$0xff] }
 0x5bc   : > { %4023 = vrcp.f32 %v1802_v44 }
 0x5bd   : > { %4025 = vrcp.f32 %v2049_v23  ;;  %v3948_v23 = vadd.f32 %v3408_v42, %v3407_v5 }
 0x5c6   : > { %v4024_v37 = vpop.eup %4023 }
 0x5c7   : > { %v2292_v57 = vmul.f32 %v4024_v37, %v2289_v22  ;;  %v4026_v28 = vpop.eup %4025  ;;  %v3422_v22 = vld [vmem:[%s4869_s17 + $0x1] ss:$0 sm:$0xff] }
 0x5c8   : > { %v2295_v33 = vsub.f32 1.0, %v4026_v28  ;;  %v2297_v63 = vmul.f32 %v4039_v62, %v4026_v28 }
 0x5c9   : > { %v2293_v20 = vadd.f32 %v2292_v57, %v2208_v19 }
 0x5cb   : > { %4027 = vtanh.f32 %v2293_v20 }
 0x5d5   : > { %v4028_v60 = vpop.eup %4027 }
 0x5d6   : > { %v2296_v61 = vmul.f32 %v4028_v60, %v2295_v33 }
 0x5d8   : > { %v2298_v0 = vadd.f32 %v2297_v63, %v2296_v61 }
 0x5da   : > { %3281 = vrot.lane.b32.xlu1 %v2298_v0, %s4053_s25  ;;  %3279 = vst.msk [vmem:[#allocation2] sm:$0xff] %vm738_vm2, %v2298_v0  ;;  %3708 = vmatmul.mubr.msk.f32.vlgmr.msra.gmra.mrb[8].mxu0 %vm738_vm2, %v2298_v0 }
 0x5db   : > { %3889 = vmatpush3.bf16.msra.mxu0 %v3888_v47  ;;  %3741 = vmatmul.mubr.msk.f32.vlgmr.msra.gmra.mrb[12].mxu1 %vm738_vm2, %v2298_v0 }
 0x5dc   : > { %3907 = vmatpush3.bf16.msra.mxu1 %v3906_v1  ;;  %3890 = vmatprep.subr.bf16.mxu0 %v4048_v6 }
 0x5dd   : > { %3908 = vmatprep.subr.bf16.mxu1 %v4048_v6  ;;  %3718 = vmatprep.mubr.msk.f32.mxu0 %vm4049_vm1, %v4050_v11 }
 0x5de   : > { %3751 = vmatprep.mubr.msk.f32.mxu1 %vm4049_vm1, %v4050_v11 }
 0x5df   : > { %3892 = vmatpush3.bf16.msra.mxu0 %v3891_v8 }
 0x5e0   : > { %3910 = vmatpush3.bf16.msra.mxu1 %v3909_v9  ;;  %3911 = vmatprep.subr.bf16.mxu0 %v4048_v6  ;;  %v3442_v9 = vld [vmem:[%s4869_s17 + $0x2] ss:$0 sm:$0xff] }
 0x5e1   : > { %3917 = vmatprep.subr.bf16.mxu1 %v4048_v6 }
 0x5e2   : > { %3719 = vmatmul.mubr.msk.f32.vlgmr.msra.gmra.mrb[8].mxu0 %vm738_vm2, %v4732_v14 }
 0x5e3   : > { %3752 = vmatmul.mubr.msk.f32.vlgmr.msra.gmra.mrb[12].mxu1 %vm738_vm2, %v4732_v14  ;;  %3913 = vmatpush3.bf16.msra.mxu0 %v3912_v16 }
 0x5e4   : > { %3919 = vmatpush3.bf16.msra.mxu1 %v3918_v17  ;;  %3914 = vmatprep.subr.bf16.mxu0 %v4048_v6 }
 0x5e5   : > { %3920 = vmatprep.subr.bf16.mxu1 %v4048_v6  ;;  %3762 = vmatprep.mubr.msk.f32.mxu0 %vm4049_vm1, %v4050_v11 }
 0x5e6   : > { %3773 = vmatprep.mubr.msk.f32.mxu1 %vm4049_vm1, %v4050_v11 }
 0x5e7   : > { %3916 = vmatpush3.bf16.msra.mxu0 %v3915_v21 }
 0x5e8   : > { %3922 = vmatpush3.bf16.msra.mxu1 %v3921_v41  ;;  %3923 = vmatprep.subr.bf16.mxu0 %v4048_v6 }
 0x5e9   : > { %3929 = vmatprep.subr.bf16.mxu1 %v4048_v6 }
 0x5ea   : > { %3763 = vmatmul.mubr.msk.f32.vlgmr.msra.gmra.mrb[10].mxu0 %vm738_vm2, %v4499_v48 }
 0x5eb   : > { %3774 = vmatmul.mubr.msk.f32.vlgmr.msra.gmra.mrb[14].mxu1 %vm738_vm2, %v2298_v0  ;;  %3925 = vmatpush3.bf16.msra.mxu0 %v3924_v35 }
 0x5ec   : > { %3931 = vmatpush3.bf16.msra.mxu1 %v3930_v50  ;;  %3795 = vmatprep.mubr.msk.f32.mxu1 %vm4049_vm1, %v4050_v11 }
 0x5ed   : > { %3932 = vmatprep.subr.bf16.mxu1 %v4048_v6  ;;  %3926 = vmatprep.subr.bf16.mxu0 %v4048_v6 }
 0x5ee   : > { %3784 = vmatprep.mubr.msk.f32.mxu0 %vm4049_vm1, %v4050_v11 }
 0x5ef   : > { %3928 = vmatpush3.bf16.msra.mxu0 %v3927_v24 }
 0x5f0   : > { %3934 = vmatpush3.bf16.msra.mxu1 %v3933_v30  ;;  %3935 = vmatprep.subr.bf16.mxu0 %v4048_v6 }
 0x5f1   : > { %3941 = vmatprep.subr.bf16.mxu1 %v4048_v6 }
 0x5f2   : > { %3785 = vmatmul.mubr.msk.f32.vlgmr.msra.gmra.mrb[12].mxu0 %vm738_vm2, %v4732_v14 }
 0x5f3   : > { %3796 = vmatmul.mubr.msk.f32.vlgmr.msra.gmra.mrb[16].mxu1 %vm738_vm2, %v4499_v48  ;;  %3806 = vmatprep.mubr.msk.f32.mxu0 %vm4049_vm1, %v4050_v11  ;;  %v3050_v48 = vld [vmem:[%s4871_s19 + $0x18] sm:$0xff] }
 0x5f4   : > { %3813 = vmatprep.mubr.msk.f32.mxu1 %vm4049_vm1, %v4050_v11  ;;  %v3198_v11 = vld [vmem:[%s4873_s21] sm:$0xff]  ;;  %3937 = vmatpush3.bf16.msra.mxu0 %v3936_v34  ;;  %v3939_v44 = vpack.c.bf16 %v3050_v48, %v3049_v52 }
 0x5f5   : > { %v3942_v59 = vpack.c.bf16 %v3199_v36, %v3198_v11  ;;  %3938 = vmatprep.subr.bf16.mxu0 %v4048_v6  ;;  %v3428_v6 = vld [vmem:[%s4870_s18 + $0x1] ss:$0 sm:$0xff] }
 0x5f6   : > { %v3950_v37 = vadd.f32 %v3428_v6, %v3422_v22 }
 0x5f7   : > { %3943 = vmatpush3.bf16.msra.mxu1 %v3942_v59 }
 0x5f8   : > { %3940 = vmatpush3.bf16.msra.mxu0 %v3939_v44 }
 0x5fa   : > { %3814 = vmatmul.mubr.msk.f32.vlgmr.msra.gmra.mrb[18].mxu1 %vm1635_vm11, %v4524_v54 }
 0x64c   : > { %v3282_v35 = vpop.permute.xlu1 %3281 }
 0x6b5   : > { %v2538_v56 = vpop.f32.mrb[8].mxu0 }
 0x6b6   : > { %v3949_v54 = vadd.f32 %v3948_v23, %v2538_v56  ;;  %v2787_v19 = vpop.f32.mrb[12].mxu1  ;;  %v3720_v57 = vpop.f32.mrb[9].mxu0 }
 0x6b7   : > { %v3753_v20 = vpop.f32.mrb[13].mxu1  ;;  %v3951_v33 = vadd.f32 %v3950_v37, %v2787_v19 }
 0x6b8   : > { %v3410_v28 = vmul.f32 -1.442695, %v3949_v54 }
 0x6b9   : > { %v3430_v4 = vmul.f32 -1.442695, %v3951_v33 }
 0x6ba   : > { %4029 = vpow2.f32 %v3410_v28 }
 0x6bb   : > { %4031 = vpow2.f32 %v3430_v4 }
 0x6bd   : > { %v2874_v3 = vpop.f32.mrb[10].mxu0 }
 0x6be   : > { %v2944_v60 = vpop.f32.mrb[14].mxu1  ;;  %v3764_v15 = vpop.f32.mrb[11].mxu0 }
 0x6bf   : > { %v2945_v38 = vadd.f32 %v2944_v60, %v2874_v3  ;;  %v3775_v61 = vpop.f32.mrb[15].mxu1 }
 0x6c1   : > { %v2956_v10 = vadd.f32 %v3442_v9, %v2945_v38 }
 0x6c4   : > { %v4030_v62 = vpop.eup %4029 }
 0x6c5   : > { %v2546_v63 = vadd.f32 1.0, %v4030_v62  ;;  %v3036_v47 = vpop.f32.mrb[12].mxu0  ;;  %v4032_v7 = vpop.eup %4031 }
 0x6c6   : > { %v3121_v0 = vpop.f32.mrb[16].mxu1  ;;  %v3786_v1 = vpop.f32.mrb[13].mxu0  ;;  %v2795_v49 = vadd.f32 1.0, %v4032_v7  ;;  %v3037_v8 = vadd.f32 %v3448_v25, %v3036_v47 }
 0x6c7   : > { %4033 = vrcp.f32 %v2546_v63  ;;  %v3797_v2 = vpop.f32.mrb[17].mxu1 }
 0x6c8   : > { %4035 = vrcp.f32 %v2795_v49 }
 0x6cd   : > { %v3266_v21 = vpop.f32.mrb[18].mxu1 }
 0x6ce   : > { %v3815_v41 = vpop.f32.mrb[19].mxu1 }
 0x6d1   : > { %v4034_v39 = vpop.eup %4033 }
 0x6d2   : > { %v3040_v12 = vmul.f32 %v4034_v39, %v3037_v8  ;;  %v4036_v16 = vpop.eup %4035 }
 0x6d3   : > { %v3043_v17 = vsub.f32 1.0, %v4036_v16  ;;  %v3045_v18 = vmul.f32 %v4036_v16, %v4732_v14 }
 0x6d4   : > { %v3041_v13 = vadd.f32 %v3040_v12, %v2956_v10 }
 0x6d6   : > { %4037 = vtanh.f32 %v3041_v13 }
 0x6e0   : > { %v4038_v26 = vpop.eup %4037 }
 0x6e1   : > { %v3044_v27 = vmul.f32 %v4038_v26, %v3043_v17 }
 0x6e3   : > { %v3046_v32 = vadd.f32 %v3045_v18, %v3044_v27 }
 0x6e5   : > { %3284 = vrot.lane.b32.xlu1 %v3046_v32, %s4054_s24  ;;  %3280 = vst.msk [vmem:[#allocation3] sm:$0xff] %vm738_vm2, %v3046_v32  ;;  %3807 = vmatmul.mubr.msk.f32.vlgmr.msra.gmra.mrb[14].mxu0 %vm738_vm2, %v3046_v32 }
 0x757   : > { %v3285_v51 = vpop.permute.xlu1 %3284 }
 0x7b8   : > { %v3194_v29 = vpop.f32.mrb[14].mxu0 }
 0x7b9   : > { %v3195_v43 = vadd.f32 %v3194_v29, %v3121_v0  ;;  %v3808_v45 = vpop.f32.mrb[15].mxu0 }
 0x7bb   : > { %v3270_v50 = vadd.f32 %v3266_v21, %v3195_v43 }
 0x7bd   : > { %v3278_v14 = vadd.f32 %v3453_v46, %v3270_v50 }
 0x7bf   : > { %v3288_v53 = vsel %vm3287_vm12, %v3278_v14, %v3282_v35 }
 0x7c0   : > { %v3290_v31 = vsel %vm3289_vm13, %v3288_v53, %v3285_v51 }
 0x7c1   : > { %3291 = vst [vmem:[%s4191_s7] sm:$0xff] %v3290_v31 }
 0x7c2 PF: > { %s4899_s25 = sld [smem:[#allocation4_spill]] }
 0x7c8   : > { %s33_s4 = sadd.s32 1, %s4899_s25  }
 0x7c9   : > { %p30_p5 = scmp.ge.s32.totalorder %s33_s4, 7  }
 0x7cb   :  { %32 = sbr.rel (!%p30_p5) target bundleno = 10 (0xa), region = 166 }

</bundles_post_ra>
